<compile_context>
chip_gen: v5e
topology: v5e:2x2
jax: 0.10.0
libtpu: 0.0.40
codegen_flags: <defaults>
</compile_context>

<pallas_src>
import functools

import jax
import jax.numpy as jnp
from jax import lax
from jax.experimental import pallas as pl
from jax.experimental.pallas import tpu as pltpu


# ----------------------------------------------------------------------------
# Fused multi-lane LSTM recurrence kernel.
# Lanes: 0 = token fwd, 1 = token bwd, 2 = sentence fwd, 3 = sentence bwd.
# xw = x @ W_ih + b is precomputed outside; the kernel only does h @ W_hh.
# ----------------------------------------------------------------------------
def _multi_lstm_kernel(reset_ref, xw_ref, whh_ref, o_ref, h_ref, c_ref):
    lane = pl.program_id(0)
    g = pl.program_id(1)
    nc = pl.num_programs(1)
    d = lane % 2                          # 0 = forward, 1 = backward traversal
    tc = xw_ref.shape[0]                  # time steps in this chunk
    H = h_ref.shape[1]
    # chunk start in global time (backward lanes walk chunks in reverse order,
    # matching the BlockSpec index_map)
    t0 = (g + d * (nc - 1 - 2 * g)) * tc

    @pl.when(g == 0)
    def _():
        h_ref[...] = jnp.zeros_like(h_ref)
        c_ref[...] = jnp.zeros_like(c_ref)

    whh = whh_ref[...]                    # (H, 4H) bf16, resident for the chunk

    def step(s, carry):
        h, c = carry
        tt = s + d * (tc - 1 - 2 * s)     # s (fwd) or tc-1-s (bwd) inside chunk
        t = t0 + tt                       # global time step
        rst = reset_ref[lane, t] != 0     # sequence / sentence boundary
        h = jnp.where(rst, jnp.zeros_like(h), h)
        c = jnp.where(rst, jnp.zeros_like(c), c)
        gates = xw_ref[tt] + jnp.dot(h.astype(jnp.bfloat16), whh,
                                     preferred_element_type=jnp.float32)  # (B,4H)
        i_g = jax.nn.sigmoid(gates[:, 0 * H:1 * H])   # PyTorch gate order i,f,g,o
        f_g = jax.nn.sigmoid(gates[:, 1 * H:2 * H])
        g_g = jnp.tanh(gates[:, 2 * H:3 * H])
        o_g = jax.nn.sigmoid(gates[:, 3 * H:4 * H])
        c = f_g * c + i_g * g_g
        h = o_g * jnp.tanh(c)
        o_ref[tt] = h.astype(o_ref.dtype)
        return h, c

    h, c = lax.fori_loop(0, tc, step, (h_ref[...], c_ref[...]), unroll=True)
    h_ref[...] = h                        # carry state to the next time chunk
    c_ref[...] = c


def multi_lane_lstm(reset_tbl, xw, whh, time_chunk):
    """xw: (L,T,B,4H) f32, whh: (L,H,4H) bf16, reset_tbl: (L,T) int32 -> (L,T,B,H) f32."""
    L, T, B, G = xw.shape
    H = whh.shape[1]
    tc = time_chunk
    nc = T // tc

    def data_map(lane, g, reset_ref):     # reversal folded into the index map
        del reset_ref
        d = lane % 2
        chunk = g + d * (nc - 1 - 2 * g)
        return (lane, chunk, 0, 0)

    return pl.pallas_call(
        _multi_lstm_kernel,
        out_shape=jax.ShapeDtypeStruct((L, T, B, H), jnp.float32),
        grid_spec=pltpu.PrefetchScalarGridSpec(
            num_scalar_prefetch=1,        # reset table lives in SMEM
            grid=(L, nc),
            in_specs=[
                pl.BlockSpec((pl.Squeezed(), tc, B, G), data_map),
                pl.BlockSpec((pl.Squeezed(), H, G), lambda lane, g, rt: (lane, 0, 0)),
            ],
            out_specs=pl.BlockSpec((pl.Squeezed(), tc, B, H), data_map),
            scratch_shapes=[pltpu.VMEM((B, H), jnp.float32),   # h carry
                            pltpu.VMEM((B, H), jnp.float32)],  # c carry
        ),
        compiler_params=pltpu.CompilerParams(
            # lanes are independent -> shard across v7x's 2 TensorCores;
            # time is the sequential recurrence axis.
            dimension_semantics=("parallel", "arbitrary"),
            vmem_limit_bytes=32 * 1024 * 1024,
        ),
    )(reset_tbl, xw, whh)


# ----------------------------------------------------------------------------
# Row-tiled fused gate + hidden2tag kernel:
#   gamma = sigmoid([f; fs] @ Wg + bg)
#   out   = (gamma * f + (1 - gamma) * fs) @ Wt + bt
# ----------------------------------------------------------------------------
def _gate_tag_kernel(f_ref, fs_ref, wgf_ref, wgs_ref, bg_ref, wt_ref, bt_ref, o_ref):
    f = f_ref[...]
    fs = fs_ref[...]
    gamma = jax.nn.sigmoid(
        jnp.dot(f.astype(jnp.bfloat16), wgf_ref[...], preferred_element_type=jnp.float32)
        + jnp.dot(fs.astype(jnp.bfloat16), wgs_ref[...], preferred_element_type=jnp.float32)
        + bg_ref[...])
    mixed = gamma * f + (1.0 - gamma) * fs
    o_ref[...] = (jnp.dot(mixed.astype(jnp.bfloat16), wt_ref[...],
                          preferred_element_type=jnp.float32)
                  + bt_ref[...]).astype(o_ref.dtype)


def _round_up(x, m):
    return (x + m - 1) // m * m


def gate_and_tag(feature_out, feature_out_sents, wg, bg, wt, bt):
    """feature_out / feature_out_sents: (T, B, Hd) time-major -> (T, B, label_size)."""
    T, B, Hd = feature_out.shape
    L = wt.shape[1]
    N = T * B
    f2 = feature_out.reshape(N, Hd)
    fs2 = feature_out_sents.reshape(N, Hd)

    tm = min(256, _round_up(N, 8))        # row tile (pipelines for large B*T)
    Np = _round_up(N, tm)
    if Np != N:
        f2 = jnp.pad(f2, ((0, Np - N), (0, 0)))
        fs2 = jnp.pad(fs2, ((0, Np - N), (0, 0)))

    Lp = _round_up(L, 128)                # lane-dense output stores
    wg_f = wg[:Hd].astype(jnp.bfloat16)   # gate weight split: feature_out part
    wg_s = wg[Hd:].astype(jnp.bfloat16)   # gate weight split: sentence part
    wt_p = jnp.zeros((Hd, Lp), jnp.bfloat16).at[:, :L].set(wt.astype(jnp.bfloat16))
    bt_p = jnp.zeros((1, Lp), jnp.float32).at[:, :L].set(bt)

    out = pl.pallas_call(
        _gate_tag_kernel,
        out_shape=jax.ShapeDtypeStruct((Np, Lp), jnp.float32),
        grid_spec=pltpu.PrefetchScalarGridSpec(
            num_scalar_prefetch=0,
            grid=(Np // tm,),
            in_specs=[
                pl.BlockSpec((tm, Hd), lambda i: (i, 0)),
                pl.BlockSpec((tm, Hd), lambda i: (i, 0)),
                pl.BlockSpec((Hd, Hd), lambda i: (0, 0)),
                pl.BlockSpec((Hd, Hd), lambda i: (0, 0)),
                pl.BlockSpec((1, Hd), lambda i: (0, 0)),
                pl.BlockSpec((Hd, Lp), lambda i: (0, 0)),
                pl.BlockSpec((1, Lp), lambda i: (0, 0)),
            ],
            out_specs=pl.BlockSpec((tm, Lp), lambda i: (i, 0)),
        ),
        compiler_params=pltpu.CompilerParams(
            dimension_semantics=("parallel",),
            vmem_limit_bytes=32 * 1024 * 1024),
    )(f2, fs2, wg_f, wg_s, bg, wt_p, bt_p)
    return out[:N, :L].reshape(T, B, L)


# ----------------------------------------------------------------------------
# WordSequence forward
# ----------------------------------------------------------------------------
def _pick_time_chunk(T):
    for tc in (32, 16, 8, 4, 2):
        if T % tc == 0:
            return tc
    return T


def word_sequence_forward(word_inputs, word_seq_lengths, *, params, n_sent,
                          time_chunk=None):
    """word_inputs: (B, T) int32 token ids; returns (B, T, label_size)."""
    del word_seq_lengths  # TODO(synk): variable-length masking not implemented
    B, T = word_inputs.shape
    assert T % n_sent == 0, "T must be divisible by n_sent"
    SL = T // n_sent
    if time_chunk is None or T % time_chunk != 0:
        time_chunk = _pick_time_chunk(T)

    lstm, sent = params["lstm"], params["sent_lstm"]

    # WordRep (simplified): single embedding gather, kept time-major (T, B, D).
    emb_t = jnp.take(params["embedding"], word_inputs.T, axis=0)      # (T, B, D)

    # Hoisted input projection for all 4 lanes as one bf16 MXU matmul.
    wih = jnp.stack([lstm["w_ih_f"], lstm["w_ih_b"],
                     sent["w_ih_f"], sent["w_ih_b"]])                 # (4, D, 4H)
    bias = jnp.stack([lstm["b_f"], lstm["b_b"],
                      sent["b_f"], sent["b_b"]])                      # (4, 1, 4H)
    xw = jnp.einsum("tbd,ldg->ltbg",
                    emb_t.astype(jnp.bfloat16), wih.astype(jnp.bfloat16),
                    preferred_element_type=jnp.float32) + bias[:, :, None, :]

    whh = jnp.stack([lstm["w_hh_f"], lstm["w_hh_b"],
                     sent["w_hh_f"], sent["w_hh_b"]]).astype(jnp.bfloat16)

    # Per-lane hidden-state reset table (prefetched into SMEM): token lanes
    # reset once per sequence, sentence lanes at every sentence boundary
    # (forward lanes at sentence start, backward lanes at sentence end).
    t = jnp.arange(T, dtype=jnp.int32)
    reset_tbl = jnp.stack([
        t == 0,                    # token fwd
        t == T - 1,                # token bwd
        (t % SL) == 0,             # sentence fwd
        (t % SL) == SL - 1,        # sentence bwd
    ]).astype(jnp.int32)

    hs = multi_lane_lstm(reset_tbl, xw, whh, time_chunk)              # (4, T, B, H)

    feature_out = jnp.concatenate([hs[0], hs[1]], axis=-1)            # (T, B, 2H)
    feature_out_sents = jnp.concatenate([hs[2], hs[3]], axis=-1)      # (T, B, 2H)

    tagged = gate_and_tag(feature_out, feature_out_sents,
                          params["gate_w"], params["gate_b"],
                          params["tag_w"], params["tag_b"])           # (T, B, L)
    return jnp.transpose(tagged, (1, 0, 2))                           # (B, T, L)


def init_params(key, vocab, emb_dim, hidden_dim, label_size):
    H = hidden_dim // 2  # bilstm_flag => lstm_hidden = HP_hidden_dim // 2
    ks = jax.random.split(key, 16)
    s = 0.1

    def lstm_params(k0, k1, k2, k3, k4, k5, in_dim):
        # bias = b_ih + b_hh pre-summed (matches PyTorch nn.LSTM's two biases).
        return {
            "w_ih_f": s * jax.random.normal(k0, (in_dim, 4 * H), jnp.float32),
            "w_hh_f": s * jax.random.normal(k1, (H, 4 * H), jnp.float32),
            "b_f": s * jax.random.normal(k2, (1, 4 * H), jnp.float32),
            "w_ih_b": s * jax.random.normal(k3, (in_dim, 4 * H), jnp.float32),
            "w_hh_b": s * jax.random.normal(k4, (H, 4 * H), jnp.float32),
            "b_b": s * jax.random.normal(k5, (1, 4 * H), jnp.float32),
        }

    return {
        "embedding": s * jax.random.normal(ks[0], (vocab, emb_dim), jnp.float32),
        "lstm": lstm_params(*ks[1:7], emb_dim),
        "sent_lstm": lstm_params(*ks[7:13], emb_dim),
        "gate_w": s * jax.random.normal(ks[13], (2 * hidden_dim, hidden_dim), jnp.float32),
        "gate_b": jnp.zeros((1, hidden_dim), jnp.float32),
        "tag_w": s * jax.random.normal(ks[14], (hidden_dim, label_size), jnp.float32),
        "tag_b": jnp.zeros((1, label_size), jnp.float32),
    }


# ----------------------------------------------------------------------------
# Pure-JAX (f32) reference used to sanity-check the Pallas pipeline.
# ----------------------------------------------------------------------------
def _lstm_ref(xw, whh, *, reverse, period):
    T, B, _ = xw.shape
    H = whh.shape[0]
    h = jnp.zeros((B, H), jnp.float32)
    c = jnp.zeros((B, H), jnp.float32)
    out = [None] * T
    order = range(T - 1, -1, -1) if reverse else range(T)
    for t in order:
        at_boundary = (t % period == period - 1) if reverse else (t % period == 0)
        if at_boundary:
            h = jnp.zeros((B, H), jnp.float32)
            c = jnp.zeros((B, H), jnp.float32)
        gates = xw[t] + h @ whh
        i_g = jax.nn.sigmoid(gates[:, :H])
        f_g = jax.nn.sigmoid(gates[:, H:2 * H])
        g_g = jnp.tanh(gates[:, 2 * H:3 * H])
        o_g = jax.nn.sigmoid(gates[:, 3 * H:])
        c = f_g * c + i_g * g_g
        h = o_g * jnp.tanh(c)
        out[t] = h
    return jnp.stack(out, axis=0)


def reference_forward(word_inputs, *, params, n_sent):
    B, T = word_inputs.shape
    SL = T // n_sent
    emb_t = jnp.take(params["embedding"], word_inputs.T, axis=0)

    def run(lp, period):
        xw_f = jnp.einsum("tbd,dg->tbg", emb_t, lp["w_ih_f"]) + lp["b_f"][None]
        xw_b = jnp.einsum("tbd,dg->tbg", emb_t, lp["w_ih_b"]) + lp["b_b"][None]
        fwd = _lstm_ref(xw_f, lp["w_hh_f"], reverse=False, period=period)
        bwd = _lstm_ref(xw_b, lp["w_hh_b"], reverse=True, period=period)
        return jnp.concatenate([fwd, bwd], axis=-1)

    f = run(params["lstm"], T)
    fs = run(params["sent_lstm"], SL)
    gamma = jax.nn.sigmoid(jnp.concatenate([f, fs], -1) @ params["gate_w"]
                           + params["gate_b"][None])
    mixed = gamma * f + (1.0 - gamma) * fs
    out = mixed @ params["tag_w"] + params["tag_b"][None]
    return jnp.transpose(out, (1, 0, 2))


if __name__ == "__main__":
    B, T = 2, 32
    vocab = 50
    word_emb_dim = 32        # data.word_emb_dim (use_bert = False)
    hidden_dim = 32          # data.HP_hidden_dim -> lstm_hidden = 16 (bilstm)
    label_size = 10          # data.label_alphabet_size
    n_sent = 4               # each sequence split into 4 sentences of length 8

    key = jax.random.PRNGKey(0)
    k_par, k_inp = jax.random.split(key)
    params = init_params(k_par, vocab, word_emb_dim, hidden_dim, label_size)
    word_inputs = jax.random.randint(k_inp, (B, T), 0, vocab, dtype=jnp.int32)
    word_seq_lengths = jnp.full((B,), T, dtype=jnp.int32)

    fwd = jax.jit(functools.partial(word_sequence_forward, params=params,
                                    n_sent=n_sent, time_chunk=8))
    out = fwd(word_inputs, word_seq_lengths)
    jax.block_until_ready(out)
    assert out.shape == (B, T, label_size), out.shape

    ref = jax.jit(functools.partial(reference_forward, params=params,
                                    n_sent=n_sent))(word_inputs)
    max_err = float(jnp.max(jnp.abs(out - ref)))
    assert max_err < 2e-2, f"mismatch vs reference: {max_err}"
    print("KERNEL_OK")
</pallas_src>

<mosaic_0001>
module attributes {stable_mosaic.version = 11 : i64} {
  func.func @_multi_lstm_kernel(%arg0: i32, %arg1: i32, %arg2: memref<4x32xi32, #tpu.memory_space<smem>>, %arg3: memref<1x8x2x64xf32, #tpu.memory_space<vmem>>, %arg4: memref<1x16x64xbf16, #tpu.memory_space<vmem>>, %arg5: memref<1x8x2x16xf32, #tpu.memory_space<vmem>>, %arg6: memref<2x16xf32, #tpu.memory_space<vmem>>, %arg7: memref<2x16xf32, #tpu.memory_space<vmem>>) attributes {dimension_semantics = [#tpu.dimension_semantics<parallel>, #tpu.dimension_semantics<arbitrary>], iteration_bounds = array<i64: 4, 4>, scalar_prefetch = 1 : i64, scratch_operands = 2 : i64, tpu.core_type = #tpu.core_type<tc>, window_params = [{transform_indices = @transform_0, window_bounds = array<i64: 1, 8, 2, 64>}, {transform_indices = @transform_1, window_bounds = array<i64: 1, 16, 64>}, {transform_indices = @transform_2, window_bounds = array<i64: 1, 8, 2, 16>}]} {
    %c2_i32 = arith.constant 2 : i32
    %c0_i32 = arith.constant 0 : i32
    %0 = arith.cmpi eq, %c2_i32, %c0_i32 : i32
    %c1_i32 = arith.constant 1 : i32
    %1 = arith.select %0, %c1_i32, %c2_i32 : i32
    %2 = arith.remsi %arg0, %1 : i32
    %c0_i32_0 = arith.constant 0 : i32
    %3 = arith.cmpi ne, %2, %c0_i32_0 : i32
    %c0_i32_1 = arith.constant 0 : i32
    %4 = arith.cmpi slt, %2, %c0_i32_1 : i32
    %c0_i32_2 = arith.constant 0 : i32
    %5 = arith.cmpi slt, %1, %c0_i32_2 : i32
    %6 = arith.xori %4, %5 : i1
    %7 = arith.andi %6, %3 : i1
    %8 = arith.addi %2, %1 : i32
    %9 = arith.select %7, %8, %2 : i32
    %c2_i32_3 = arith.constant 2 : i32
    %10 = arith.muli %c2_i32_3, %arg1 : i32
    %c3_i32 = arith.constant 3 : i32
    %11 = arith.subi %c3_i32, %10 : i32
    %12 = arith.muli %9, %11 : i32
    %13 = arith.addi %arg1, %12 : i32
    %c8_i32 = arith.constant 8 : i32
    %14 = arith.muli %13, %c8_i32 : i32
    %c0_i32_4 = arith.constant 0 : i32
    %15 = arith.cmpi eq, %arg1, %c0_i32_4 : i32
    %16 = arith.extui %15 : i1 to i32
    %c0_i32_5 = arith.constant 0 : i32
    %17 = arith.cmpi ne, %16, %c0_i32_5 : i32
    scf.if %17 {
      %cst_140 = arith.constant 0.000000e+00 : f32
      %408 = vector.broadcast %cst_140 : f32 to vector<2x16xf32>
      %c0_141 = arith.constant 0 : index
      %c0_142 = arith.constant 0 : index
      %409 = vector.load %arg6[%c0_141, %c0_142] : memref<2x16xf32, #tpu.memory_space<vmem>>, vector<2x16xf32>
      tpu.vector_store %arg6[%c0_141, %c0_142], %408 {strides = array<i32>} : memref<2x16xf32, #tpu.memory_space<vmem>>, vector<2x16xf32>,
      %cst_143 = arith.constant 0.000000e+00 : f32
      %410 = vector.broadcast %cst_143 : f32 to vector<2x16xf32>
      %c0_144 = arith.constant 0 : index
      %c0_145 = arith.constant 0 : index
      %411 = vector.load %arg7[%c0_144, %c0_145] : memref<2x16xf32, #tpu.memory_space<vmem>>, vector<2x16xf32>
      tpu.vector_store %arg7[%c0_144, %c0_145], %410 {strides = array<i32>} : memref<2x16xf32, #tpu.memory_space<vmem>>, vector<2x16xf32>,
    } else {
    }
    %c0 = arith.constant 0 : index
    %c0_6 = arith.constant 0 : index
    %c0_7 = arith.constant 0 : index
    %18 = vector.load %arg4[%c0, %c0_6, %c0_7] : memref<1x16x64xbf16, #tpu.memory_space<vmem>>, vector<1x16x64xbf16>
    %19 = vector.shape_cast %18 : vector<1x16x64xbf16> to vector<16x64xbf16>
    %c0_8 = arith.constant 0 : index
    %c0_9 = arith.constant 0 : index
    %20 = vector.load %arg6[%c0_8, %c0_9] : memref<2x16xf32, #tpu.memory_space<vmem>>, vector<2x16xf32>
    %c0_10 = arith.constant 0 : index
    %c0_11 = arith.constant 0 : index
    %21 = vector.load %arg7[%c0_10, %c0_11] : memref<2x16xf32, #tpu.memory_space<vmem>>, vector<2x16xf32>
    %c0_i32_12 = arith.constant 0 : i32
    %c2_i32_13 = arith.constant 2 : i32
    %22 = arith.muli %c2_i32_13, %c0_i32_12 : i32
    %c7_i32 = arith.constant 7 : i32
    %23 = arith.subi %c7_i32, %22 : i32
    %24 = arith.muli %9, %23 : i32
    %25 = arith.addi %c0_i32_12, %24 : i32
    %26 = arith.addi %14, %25 : i32
    %27 = arith.index_cast %arg0 : i32 to index
    %28 = arith.index_cast %26 : i32 to index
    %29 = memref.load %arg2[%27, %28] : memref<4x32xi32, #tpu.memory_space<smem>>
    %c0_i32_14 = arith.constant 0 : i32
    %30 = arith.cmpi ne, %29, %c0_i32_14 : i32
    %cst = arith.constant 0.000000e+00 : f32
    %31 = vector.broadcast %cst : f32 to vector<2x16xf32>
    %32 = arith.select %30, %31, %20 : vector<2x16xf32>
    %cst_15 = arith.constant 0.000000e+00 : f32
    %33 = vector.broadcast %cst_15 : f32 to vector<2x16xf32>
    %34 = arith.select %30, %33, %21 : vector<2x16xf32>
    %c0_16 = arith.constant 0 : index
    %35 = arith.index_cast %25 : i32 to index
    %c0_17 = arith.constant 0 : index
    %c0_18 = arith.constant 0 : index
    %36 = vector.load %arg3[%c0_16, %35, %c0_17, %c0_18] : memref<1x8x2x64xf32, #tpu.memory_space<vmem>>, vector<1x1x2x64xf32>
    %37 = vector.shape_cast %36 : vector<1x1x2x64xf32> to vector<2x64xf32>
    %38 = arith.truncf %32 : vector<2x16xf32> to vector<2x16xbf16>
    %cst_19 = arith.constant dense<0.000000e+00> : vector<2x64xf32>
    %39 = tpu.matmul %38, %19, %cst_19 {dimension_numbers = #tpu.dot_dimension_numbers<[1], [0], [0], [1], [0, 0, 1, 1], [], []>} : vector<2x16xbf16>, vector<16x64xbf16>, vector<2x64xf32> -> vector<2x64xf32>
    %40 = arith.addf %37, %39 : vector<2x64xf32>
    %41 = vector.extract_strided_slice %40 {offsets = [0, 0], sizes = [2, 16], strides = [1, 1]} : vector<2x64xf32> to vector<2x16xf32>
    %42 = arith.negf %41 : vector<2x16xf32>
    %43 = math.exp %42 : vector<2x16xf32>
    %cst_20 = arith.constant 1.000000e+00 : f32
    %44 = vector.broadcast %cst_20 : f32 to vector<2x16xf32>
    %45 = arith.addf %44, %43 : vector<2x16xf32>
    %46 = arith.divf %44, %45 : vector<2x16xf32>
    %47 = vector.extract_strided_slice %40 {offsets = [0, 16], sizes = [2, 16], strides = [1, 1]} : vector<2x64xf32> to vector<2x16xf32>
    %48 = arith.negf %47 : vector<2x16xf32>
    %49 = math.exp %48 : vector<2x16xf32>
    %cst_21 = arith.constant 1.000000e+00 : f32
    %50 = vector.broadcast %cst_21 : f32 to vector<2x16xf32>
    %51 = arith.addf %50, %49 : vector<2x16xf32>
    %52 = arith.divf %50, %51 : vector<2x16xf32>
    %53 = vector.extract_strided_slice %40 {offsets = [0, 32], sizes = [2, 16], strides = [1, 1]} : vector<2x64xf32> to vector<2x16xf32>
    %54 = math.tanh %53 : vector<2x16xf32>
    %55 = vector.extract_strided_slice %40 {offsets = [0, 48], sizes = [2, 16], strides = [1, 1]} : vector<2x64xf32> to vector<2x16xf32>
    %56 = arith.negf %55 : vector<2x16xf32>
    %57 = math.exp %56 : vector<2x16xf32>
    %cst_22 = arith.constant 1.000000e+00 : f32
    %58 = vector.broadcast %cst_22 : f32 to vector<2x16xf32>
    %59 = arith.addf %58, %57 : vector<2x16xf32>
    %60 = arith.divf %58, %59 : vector<2x16xf32>
    %61 = arith.mulf %52, %34 : vector<2x16xf32>
    %62 = arith.mulf %46, %54 : vector<2x16xf32>
    %63 = arith.addf %61, %62 : vector<2x16xf32>
    %64 = math.tanh %63 : vector<2x16xf32>
    %65 = arith.mulf %60, %64 : vector<2x16xf32>
    %c0_23 = arith.constant 0 : index
    %66 = arith.index_cast %25 : i32 to index
    %c0_24 = arith.constant 0 : index
    %c0_25 = arith.constant 0 : index
    %67 = vector.load %arg5[%c0_23, %66, %c0_24, %c0_25] : memref<1x8x2x16xf32, #tpu.memory_space<vmem>>, vector<1x1x2x16xf32>
    %68 = vector.shape_cast %67 : vector<1x1x2x16xf32> to vector<2x16xf32>
    %69 = vector.shape_cast %65 : vector<2x16xf32> to vector<1x1x2x16xf32>
    tpu.vector_store %arg5[%c0_23, %66, %c0_24, %c0_25], %69 {strides = array<i32>} : memref<1x8x2x16xf32, #tpu.memory_space<vmem>>, vector<1x1x2x16xf32>,
    %c1_i32_26 = arith.constant 1 : i32
    %c2_i32_27 = arith.constant 2 : i32
    %70 = arith.muli %c2_i32_27, %c1_i32_26 : i32
    %c7_i32_28 = arith.constant 7 : i32
    %71 = arith.subi %c7_i32_28, %70 : i32
    %72 = arith.muli %9, %71 : i32
    %73 = arith.addi %c1_i32_26, %72 : i32
    %74 = arith.addi %14, %73 : i32
    %75 = arith.index_cast %arg0 : i32 to index
    %76 = arith.index_cast %74 : i32 to index
    %77 = memref.load %arg2[%75, %76] : memref<4x32xi32, #tpu.memory_space<smem>>
    %c0_i32_29 = arith.constant 0 : i32
    %78 = arith.cmpi ne, %77, %c0_i32_29 : i32
    %cst_30 = arith.constant 0.000000e+00 : f32
    %79 = vector.broadcast %cst_30 : f32 to vector<2x16xf32>
    %80 = arith.select %78, %79, %65 : vector<2x16xf32>
    %cst_31 = arith.constant 0.000000e+00 : f32
    %81 = vector.broadcast %cst_31 : f32 to vector<2x16xf32>
    %82 = arith.select %78, %81, %63 : vector<2x16xf32>
    %c0_32 = arith.constant 0 : index
    %83 = arith.index_cast %73 : i32 to index
    %c0_33 = arith.constant 0 : index
    %c0_34 = arith.constant 0 : index
    %84 = vector.load %arg3[%c0_32, %83, %c0_33, %c0_34] : memref<1x8x2x64xf32, #tpu.memory_space<vmem>>, vector<1x1x2x64xf32>
    %85 = vector.shape_cast %84 : vector<1x1x2x64xf32> to vector<2x64xf32>
    %86 = arith.truncf %80 : vector<2x16xf32> to vector<2x16xbf16>
    %cst_35 = arith.constant dense<0.000000e+00> : vector<2x64xf32>
    %87 = tpu.matmul %86, %19, %cst_35 {dimension_numbers = #tpu.dot_dimension_numbers<[1], [0], [0], [1], [0, 0, 1, 1], [], []>} : vector<2x16xbf16>, vector<16x64xbf16>, vector<2x64xf32> -> vector<2x64xf32>
    %88 = arith.addf %85, %87 : vector<2x64xf32>
    %89 = vector.extract_strided_slice %88 {offsets = [0, 0], sizes = [2, 16], strides = [1, 1]} : vector<2x64xf32> to vector<2x16xf32>
    %90 = arith.negf %89 : vector<2x16xf32>
    %91 = math.exp %90 : vector<2x16xf32>
    %cst_36 = arith.constant 1.000000e+00 : f32
    %92 = vector.broadcast %cst_36 : f32 to vector<2x16xf32>
    %93 = arith.addf %92, %91 : vector<2x16xf32>
    %94 = arith.divf %92, %93 : vector<2x16xf32>
    %95 = vector.extract_strided_slice %88 {offsets = [0, 16], sizes = [2, 16], strides = [1, 1]} : vector<2x64xf32> to vector<2x16xf32>
    %96 = arith.negf %95 : vector<2x16xf32>
    %97 = math.exp %96 : vector<2x16xf32>
    %cst_37 = arith.constant 1.000000e+00 : f32
    %98 = vector.broadcast %cst_37 : f32 to vector<2x16xf32>
    %99 = arith.addf %98, %97 : vector<2x16xf32>
    %100 = arith.divf %98, %99 : vector<2x16xf32>
    %101 = vector.extract_strided_slice %88 {offsets = [0, 32], sizes = [2, 16], strides = [1, 1]} : vector<2x64xf32> to vector<2x16xf32>
    %102 = math.tanh %101 : vector<2x16xf32>
    %103 = vector.extract_strided_slice %88 {offsets = [0, 48], sizes = [2, 16], strides = [1, 1]} : vector<2x64xf32> to vector<2x16xf32>
    %104 = arith.negf %103 : vector<2x16xf32>
    %105 = math.exp %104 : vector<2x16xf32>
    %cst_38 = arith.constant 1.000000e+00 : f32
    %106 = vector.broadcast %cst_38 : f32 to vector<2x16xf32>
    %107 = arith.addf %106, %105 : vector<2x16xf32>
    %108 = arith.divf %106, %107 : vector<2x16xf32>
    %109 = arith.mulf %100, %82 : vector<2x16xf32>
    %110 = arith.mulf %94, %102 : vector<2x16xf32>
    %111 = arith.addf %109, %110 : vector<2x16xf32>
    %112 = math.tanh %111 : vector<2x16xf32>
    %113 = arith.mulf %108, %112 : vector<2x16xf32>
    %c0_39 = arith.constant 0 : index
    %114 = arith.index_cast %73 : i32 to index
    %c0_40 = arith.constant 0 : index
    %c0_41 = arith.constant 0 : index
    %115 = vector.load %arg5[%c0_39, %114, %c0_40, %c0_41] : memref<1x8x2x16xf32, #tpu.memory_space<vmem>>, vector<1x1x2x16xf32>
    %116 = vector.shape_cast %115 : vector<1x1x2x16xf32> to vector<2x16xf32>
    %117 = vector.shape_cast %113 : vector<2x16xf32> to vector<1x1x2x16xf32>
    tpu.vector_store %arg5[%c0_39, %114, %c0_40, %c0_41], %117 {strides = array<i32>} : memref<1x8x2x16xf32, #tpu.memory_space<vmem>>, vector<1x1x2x16xf32>,
    %c2_i32_42 = arith.constant 2 : i32
    %c2_i32_43 = arith.constant 2 : i32
    %118 = arith.muli %c2_i32_43, %c2_i32_42 : i32
    %c7_i32_44 = arith.constant 7 : i32
    %119 = arith.subi %c7_i32_44, %118 : i32
    %120 = arith.muli %9, %119 : i32
    %121 = arith.addi %c2_i32_42, %120 : i32
    %122 = arith.addi %14, %121 : i32
    %123 = arith.index_cast %arg0 : i32 to index
    %124 = arith.index_cast %122 : i32 to index
    %125 = memref.load %arg2[%123, %124] : memref<4x32xi32, #tpu.memory_space<smem>>
    %c0_i32_45 = arith.constant 0 : i32
    %126 = arith.cmpi ne, %125, %c0_i32_45 : i32
    %cst_46 = arith.constant 0.000000e+00 : f32
    %127 = vector.broadcast %cst_46 : f32 to vector<2x16xf32>
    %128 = arith.select %126, %127, %113 : vector<2x16xf32>
    %cst_47 = arith.constant 0.000000e+00 : f32
    %129 = vector.broadcast %cst_47 : f32 to vector<2x16xf32>
    %130 = arith.select %126, %129, %111 : vector<2x16xf32>
    %c0_48 = arith.constant 0 : index
    %131 = arith.index_cast %121 : i32 to index
    %c0_49 = arith.constant 0 : index
    %c0_50 = arith.constant 0 : index
    %132 = vector.load %arg3[%c0_48, %131, %c0_49, %c0_50] : memref<1x8x2x64xf32, #tpu.memory_space<vmem>>, vector<1x1x2x64xf32>
    %133 = vector.shape_cast %132 : vector<1x1x2x64xf32> to vector<2x64xf32>
    %134 = arith.truncf %128 : vector<2x16xf32> to vector<2x16xbf16>
    %cst_51 = arith.constant dense<0.000000e+00> : vector<2x64xf32>
    %135 = tpu.matmul %134, %19, %cst_51 {dimension_numbers = #tpu.dot_dimension_numbers<[1], [0], [0], [1], [0, 0, 1, 1], [], []>} : vector<2x16xbf16>, vector<16x64xbf16>, vector<2x64xf32> -> vector<2x64xf32>
    %136 = arith.addf %133, %135 : vector<2x64xf32>
    %137 = vector.extract_strided_slice %136 {offsets = [0, 0], sizes = [2, 16], strides = [1, 1]} : vector<2x64xf32> to vector<2x16xf32>
    %138 = arith.negf %137 : vector<2x16xf32>
    %139 = math.exp %138 : vector<2x16xf32>
    %cst_52 = arith.constant 1.000000e+00 : f32
    %140 = vector.broadcast %cst_52 : f32 to vector<2x16xf32>
    %141 = arith.addf %140, %139 : vector<2x16xf32>
    %142 = arith.divf %140, %141 : vector<2x16xf32>
    %143 = vector.extract_strided_slice %136 {offsets = [0, 16], sizes = [2, 16], strides = [1, 1]} : vector<2x64xf32> to vector<2x16xf32>
    %144 = arith.negf %143 : vector<2x16xf32>
    %145 = math.exp %144 : vector<2x16xf32>
    %cst_53 = arith.constant 1.000000e+00 : f32
    %146 = vector.broadcast %cst_53 : f32 to vector<2x16xf32>
    %147 = arith.addf %146, %145 : vector<2x16xf32>
    %148 = arith.divf %146, %147 : vector<2x16xf32>
    %149 = vector.extract_strided_slice %136 {offsets = [0, 32], sizes = [2, 16], strides = [1, 1]} : vector<2x64xf32> to vector<2x16xf32>
    %150 = math.tanh %149 : vector<2x16xf32>
    %151 = vector.extract_strided_slice %136 {offsets = [0, 48], sizes = [2, 16], strides = [1, 1]} : vector<2x64xf32> to vector<2x16xf32>
    %152 = arith.negf %151 : vector<2x16xf32>
    %153 = math.exp %152 : vector<2x16xf32>
    %cst_54 = arith.constant 1.000000e+00 : f32
    %154 = vector.broadcast %cst_54 : f32 to vector<2x16xf32>
    %155 = arith.addf %154, %153 : vector<2x16xf32>
    %156 = arith.divf %154, %155 : vector<2x16xf32>
    %157 = arith.mulf %148, %130 : vector<2x16xf32>
    %158 = arith.mulf %142, %150 : vector<2x16xf32>
    %159 = arith.addf %157, %158 : vector<2x16xf32>
    %160 = math.tanh %159 : vector<2x16xf32>
    %161 = arith.mulf %156, %160 : vector<2x16xf32>
    %c0_55 = arith.constant 0 : index
    %162 = arith.index_cast %121 : i32 to index
    %c0_56 = arith.constant 0 : index
    %c0_57 = arith.constant 0 : index
    %163 = vector.load %arg5[%c0_55, %162, %c0_56, %c0_57] : memref<1x8x2x16xf32, #tpu.memory_space<vmem>>, vector<1x1x2x16xf32>
    %164 = vector.shape_cast %163 : vector<1x1x2x16xf32> to vector<2x16xf32>
    %165 = vector.shape_cast %161 : vector<2x16xf32> to vector<1x1x2x16xf32>
    tpu.vector_store %arg5[%c0_55, %162, %c0_56, %c0_57], %165 {strides = array<i32>} : memref<1x8x2x16xf32, #tpu.memory_space<vmem>>, vector<1x1x2x16xf32>,
    %c3_i32_58 = arith.constant 3 : i32
    %c2_i32_59 = arith.constant 2 : i32
    %166 = arith.muli %c2_i32_59, %c3_i32_58 : i32
    %c7_i32_60 = arith.constant 7 : i32
    %167 = arith.subi %c7_i32_60, %166 : i32
    %168 = arith.muli %9, %167 : i32
    %169 = arith.addi %c3_i32_58, %168 : i32
    %170 = arith.addi %14, %169 : i32
    %171 = arith.index_cast %arg0 : i32 to index
    %172 = arith.index_cast %170 : i32 to index
    %173 = memref.load %arg2[%171, %172] : memref<4x32xi32, #tpu.memory_space<smem>>
    %c0_i32_61 = arith.constant 0 : i32
    %174 = arith.cmpi ne, %173, %c0_i32_61 : i32
    %cst_62 = arith.constant 0.000000e+00 : f32
    %175 = vector.broadcast %cst_62 : f32 to vector<2x16xf32>
    %176 = arith.select %174, %175, %161 : vector<2x16xf32>
    %cst_63 = arith.constant 0.000000e+00 : f32
    %177 = vector.broadcast %cst_63 : f32 to vector<2x16xf32>
    %178 = arith.select %174, %177, %159 : vector<2x16xf32>
    %c0_64 = arith.constant 0 : index
    %179 = arith.index_cast %169 : i32 to index
    %c0_65 = arith.constant 0 : index
    %c0_66 = arith.constant 0 : index
    %180 = vector.load %arg3[%c0_64, %179, %c0_65, %c0_66] : memref<1x8x2x64xf32, #tpu.memory_space<vmem>>, vector<1x1x2x64xf32>
    %181 = vector.shape_cast %180 : vector<1x1x2x64xf32> to vector<2x64xf32>
    %182 = arith.truncf %176 : vector<2x16xf32> to vector<2x16xbf16>
    %cst_67 = arith.constant dense<0.000000e+00> : vector<2x64xf32>
    %183 = tpu.matmul %182, %19, %cst_67 {dimension_numbers = #tpu.dot_dimension_numbers<[1], [0], [0], [1], [0, 0, 1, 1], [], []>} : vector<2x16xbf16>, vector<16x64xbf16>, vector<2x64xf32> -> vector<2x64xf32>
    %184 = arith.addf %181, %183 : vector<2x64xf32>
    %185 = vector.extract_strided_slice %184 {offsets = [0, 0], sizes = [2, 16], strides = [1, 1]} : vector<2x64xf32> to vector<2x16xf32>
    %186 = arith.negf %185 : vector<2x16xf32>
    %187 = math.exp %186 : vector<2x16xf32>
    %cst_68 = arith.constant 1.000000e+00 : f32
    %188 = vector.broadcast %cst_68 : f32 to vector<2x16xf32>
    %189 = arith.addf %188, %187 : vector<2x16xf32>
    %190 = arith.divf %188, %189 : vector<2x16xf32>
    %191 = vector.extract_strided_slice %184 {offsets = [0, 16], sizes = [2, 16], strides = [1, 1]} : vector<2x64xf32> to vector<2x16xf32>
    %192 = arith.negf %191 : vector<2x16xf32>
    %193 = math.exp %192 : vector<2x16xf32>
    %cst_69 = arith.constant 1.000000e+00 : f32
    %194 = vector.broadcast %cst_69 : f32 to vector<2x16xf32>
    %195 = arith.addf %194, %193 : vector<2x16xf32>
    %196 = arith.divf %194, %195 : vector<2x16xf32>
    %197 = vector.extract_strided_slice %184 {offsets = [0, 32], sizes = [2, 16], strides = [1, 1]} : vector<2x64xf32> to vector<2x16xf32>
    %198 = math.tanh %197 : vector<2x16xf32>
    %199 = vector.extract_strided_slice %184 {offsets = [0, 48], sizes = [2, 16], strides = [1, 1]} : vector<2x64xf32> to vector<2x16xf32>
    %200 = arith.negf %199 : vector<2x16xf32>
    %201 = math.exp %200 : vector<2x16xf32>
    %cst_70 = arith.constant 1.000000e+00 : f32
    %202 = vector.broadcast %cst_70 : f32 to vector<2x16xf32>
    %203 = arith.addf %202, %201 : vector<2x16xf32>
    %204 = arith.divf %202, %203 : vector<2x16xf32>
    %205 = arith.mulf %196, %178 : vector<2x16xf32>
    %206 = arith.mulf %190, %198 : vector<2x16xf32>
    %207 = arith.addf %205, %206 : vector<2x16xf32>
    %208 = math.tanh %207 : vector<2x16xf32>
    %209 = arith.mulf %204, %208 : vector<2x16xf32>
    %c0_71 = arith.constant 0 : index
    %210 = arith.index_cast %169 : i32 to index
    %c0_72 = arith.constant 0 : index
    %c0_73 = arith.constant 0 : index
    %211 = vector.load %arg5[%c0_71, %210, %c0_72, %c0_73] : memref<1x8x2x16xf32, #tpu.memory_space<vmem>>, vector<1x1x2x16xf32>
    %212 = vector.shape_cast %211 : vector<1x1x2x16xf32> to vector<2x16xf32>
    %213 = vector.shape_cast %209 : vector<2x16xf32> to vector<1x1x2x16xf32>
    tpu.vector_store %arg5[%c0_71, %210, %c0_72, %c0_73], %213 {strides = array<i32>} : memref<1x8x2x16xf32, #tpu.memory_space<vmem>>, vector<1x1x2x16xf32>,
    %c4_i32 = arith.constant 4 : i32
    %c2_i32_74 = arith.constant 2 : i32
    %214 = arith.muli %c2_i32_74, %c4_i32 : i32
    %c7_i32_75 = arith.constant 7 : i32
    %215 = arith.subi %c7_i32_75, %214 : i32
    %216 = arith.muli %9, %215 : i32
    %217 = arith.addi %c4_i32, %216 : i32
    %218 = arith.addi %14, %217 : i32
    %219 = arith.index_cast %arg0 : i32 to index
    %220 = arith.index_cast %218 : i32 to index
    %221 = memref.load %arg2[%219, %220] : memref<4x32xi32, #tpu.memory_space<smem>>
    %c0_i32_76 = arith.constant 0 : i32
    %222 = arith.cmpi ne, %221, %c0_i32_76 : i32
    %cst_77 = arith.constant 0.000000e+00 : f32
    %223 = vector.broadcast %cst_77 : f32 to vector<2x16xf32>
    %224 = arith.select %222, %223, %209 : vector<2x16xf32>
    %cst_78 = arith.constant 0.000000e+00 : f32
    %225 = vector.broadcast %cst_78 : f32 to vector<2x16xf32>
    %226 = arith.select %222, %225, %207 : vector<2x16xf32>
    %c0_79 = arith.constant 0 : index
    %227 = arith.index_cast %217 : i32 to index
    %c0_80 = arith.constant 0 : index
    %c0_81 = arith.constant 0 : index
    %228 = vector.load %arg3[%c0_79, %227, %c0_80, %c0_81] : memref<1x8x2x64xf32, #tpu.memory_space<vmem>>, vector<1x1x2x64xf32>
    %229 = vector.shape_cast %228 : vector<1x1x2x64xf32> to vector<2x64xf32>
    %230 = arith.truncf %224 : vector<2x16xf32> to vector<2x16xbf16>
    %cst_82 = arith.constant dense<0.000000e+00> : vector<2x64xf32>
    %231 = tpu.matmul %230, %19, %cst_82 {dimension_numbers = #tpu.dot_dimension_numbers<[1], [0], [0], [1], [0, 0, 1, 1], [], []>} : vector<2x16xbf16>, vector<16x64xbf16>, vector<2x64xf32> -> vector<2x64xf32>
    %232 = arith.addf %229, %231 : vector<2x64xf32>
    %233 = vector.extract_strided_slice %232 {offsets = [0, 0], sizes = [2, 16], strides = [1, 1]} : vector<2x64xf32> to vector<2x16xf32>
    %234 = arith.negf %233 : vector<2x16xf32>
    %235 = math.exp %234 : vector<2x16xf32>
    %cst_83 = arith.constant 1.000000e+00 : f32
    %236 = vector.broadcast %cst_83 : f32 to vector<2x16xf32>
    %237 = arith.addf %236, %235 : vector<2x16xf32>
    %238 = arith.divf %236, %237 : vector<2x16xf32>
    %239 = vector.extract_strided_slice %232 {offsets = [0, 16], sizes = [2, 16], strides = [1, 1]} : vector<2x64xf32> to vector<2x16xf32>
    %240 = arith.negf %239 : vector<2x16xf32>
    %241 = math.exp %240 : vector<2x16xf32>
    %cst_84 = arith.constant 1.000000e+00 : f32
    %242 = vector.broadcast %cst_84 : f32 to vector<2x16xf32>
    %243 = arith.addf %242, %241 : vector<2x16xf32>
    %244 = arith.divf %242, %243 : vector<2x16xf32>
    %245 = vector.extract_strided_slice %232 {offsets = [0, 32], sizes = [2, 16], strides = [1, 1]} : vector<2x64xf32> to vector<2x16xf32>
    %246 = math.tanh %245 : vector<2x16xf32>
    %247 = vector.extract_strided_slice %232 {offsets = [0, 48], sizes = [2, 16], strides = [1, 1]} : vector<2x64xf32> to vector<2x16xf32>
    %248 = arith.negf %247 : vector<2x16xf32>
    %249 = math.exp %248 : vector<2x16xf32>
    %cst_85 = arith.constant 1.000000e+00 : f32
    %250 = vector.broadcast %cst_85 : f32 to vector<2x16xf32>
    %251 = arith.addf %250, %249 : vector<2x16xf32>
    %252 = arith.divf %250, %251 : vector<2x16xf32>
    %253 = arith.mulf %244, %226 : vector<2x16xf32>
    %254 = arith.mulf %238, %246 : vector<2x16xf32>
    %255 = arith.addf %253, %254 : vector<2x16xf32>
    %256 = math.tanh %255 : vector<2x16xf32>
    %257 = arith.mulf %252, %256 : vector<2x16xf32>
    %c0_86 = arith.constant 0 : index
    %258 = arith.index_cast %217 : i32 to index
    %c0_87 = arith.constant 0 : index
    %c0_88 = arith.constant 0 : index
    %259 = vector.load %arg5[%c0_86, %258, %c0_87, %c0_88] : memref<1x8x2x16xf32, #tpu.memory_space<vmem>>, vector<1x1x2x16xf32>
    %260 = vector.shape_cast %259 : vector<1x1x2x16xf32> to vector<2x16xf32>
    %261 = vector.shape_cast %257 : vector<2x16xf32> to vector<1x1x2x16xf32>
    tpu.vector_store %arg5[%c0_86, %258, %c0_87, %c0_88], %261 {strides = array<i32>} : memref<1x8x2x16xf32, #tpu.memory_space<vmem>>, vector<1x1x2x16xf32>,
    %c5_i32 = arith.constant 5 : i32
    %c2_i32_89 = arith.constant 2 : i32
    %262 = arith.muli %c2_i32_89, %c5_i32 : i32
    %c7_i32_90 = arith.constant 7 : i32
    %263 = arith.subi %c7_i32_90, %262 : i32
    %264 = arith.muli %9, %263 : i32
    %265 = arith.addi %c5_i32, %264 : i32
    %266 = arith.addi %14, %265 : i32
    %267 = arith.index_cast %arg0 : i32 to index
    %268 = arith.index_cast %266 : i32 to index
    %269 = memref.load %arg2[%267, %268] : memref<4x32xi32, #tpu.memory_space<smem>>
    %c0_i32_91 = arith.constant 0 : i32
    %270 = arith.cmpi ne, %269, %c0_i32_91 : i32
    %cst_92 = arith.constant 0.000000e+00 : f32
    %271 = vector.broadcast %cst_92 : f32 to vector<2x16xf32>
    %272 = arith.select %270, %271, %257 : vector<2x16xf32>
    %cst_93 = arith.constant 0.000000e+00 : f32
    %273 = vector.broadcast %cst_93 : f32 to vector<2x16xf32>
    %274 = arith.select %270, %273, %255 : vector<2x16xf32>
    %c0_94 = arith.constant 0 : index
    %275 = arith.index_cast %265 : i32 to index
    %c0_95 = arith.constant 0 : index
    %c0_96 = arith.constant 0 : index
    %276 = vector.load %arg3[%c0_94, %275, %c0_95, %c0_96] : memref<1x8x2x64xf32, #tpu.memory_space<vmem>>, vector<1x1x2x64xf32>
    %277 = vector.shape_cast %276 : vector<1x1x2x64xf32> to vector<2x64xf32>
    %278 = arith.truncf %272 : vector<2x16xf32> to vector<2x16xbf16>
    %cst_97 = arith.constant dense<0.000000e+00> : vector<2x64xf32>
    %279 = tpu.matmul %278, %19, %cst_97 {dimension_numbers = #tpu.dot_dimension_numbers<[1], [0], [0], [1], [0, 0, 1, 1], [], []>} : vector<2x16xbf16>, vector<16x64xbf16>, vector<2x64xf32> -> vector<2x64xf32>
    %280 = arith.addf %277, %279 : vector<2x64xf32>
    %281 = vector.extract_strided_slice %280 {offsets = [0, 0], sizes = [2, 16], strides = [1, 1]} : vector<2x64xf32> to vector<2x16xf32>
    %282 = arith.negf %281 : vector<2x16xf32>
    %283 = math.exp %282 : vector<2x16xf32>
    %cst_98 = arith.constant 1.000000e+00 : f32
    %284 = vector.broadcast %cst_98 : f32 to vector<2x16xf32>
    %285 = arith.addf %284, %283 : vector<2x16xf32>
    %286 = arith.divf %284, %285 : vector<2x16xf32>
    %287 = vector.extract_strided_slice %280 {offsets = [0, 16], sizes = [2, 16], strides = [1, 1]} : vector<2x64xf32> to vector<2x16xf32>
    %288 = arith.negf %287 : vector<2x16xf32>
    %289 = math.exp %288 : vector<2x16xf32>
    %cst_99 = arith.constant 1.000000e+00 : f32
    %290 = vector.broadcast %cst_99 : f32 to vector<2x16xf32>
    %291 = arith.addf %290, %289 : vector<2x16xf32>
    %292 = arith.divf %290, %291 : vector<2x16xf32>
    %293 = vector.extract_strided_slice %280 {offsets = [0, 32], sizes = [2, 16], strides = [1, 1]} : vector<2x64xf32> to vector<2x16xf32>
    %294 = math.tanh %293 : vector<2x16xf32>
    %295 = vector.extract_strided_slice %280 {offsets = [0, 48], sizes = [2, 16], strides = [1, 1]} : vector<2x64xf32> to vector<2x16xf32>
    %296 = arith.negf %295 : vector<2x16xf32>
    %297 = math.exp %296 : vector<2x16xf32>
    %cst_100 = arith.constant 1.000000e+00 : f32
    %298 = vector.broadcast %cst_100 : f32 to vector<2x16xf32>
    %299 = arith.addf %298, %297 : vector<2x16xf32>
    %300 = arith.divf %298, %299 : vector<2x16xf32>
    %301 = arith.mulf %292, %274 : vector<2x16xf32>
    %302 = arith.mulf %286, %294 : vector<2x16xf32>
    %303 = arith.addf %301, %302 : vector<2x16xf32>
    %304 = math.tanh %303 : vector<2x16xf32>
    %305 = arith.mulf %300, %304 : vector<2x16xf32>
    %c0_101 = arith.constant 0 : index
    %306 = arith.index_cast %265 : i32 to index
    %c0_102 = arith.constant 0 : index
    %c0_103 = arith.constant 0 : index
    %307 = vector.load %arg5[%c0_101, %306, %c0_102, %c0_103] : memref<1x8x2x16xf32, #tpu.memory_space<vmem>>, vector<1x1x2x16xf32>
    %308 = vector.shape_cast %307 : vector<1x1x2x16xf32> to vector<2x16xf32>
    %309 = vector.shape_cast %305 : vector<2x16xf32> to vector<1x1x2x16xf32>
    tpu.vector_store %arg5[%c0_101, %306, %c0_102, %c0_103], %309 {strides = array<i32>} : memref<1x8x2x16xf32, #tpu.memory_space<vmem>>, vector<1x1x2x16xf32>,
    %c6_i32 = arith.constant 6 : i32
    %c2_i32_104 = arith.constant 2 : i32
    %310 = arith.muli %c2_i32_104, %c6_i32 : i32
    %c7_i32_105 = arith.constant 7 : i32
    %311 = arith.subi %c7_i32_105, %310 : i32
    %312 = arith.muli %9, %311 : i32
    %313 = arith.addi %c6_i32, %312 : i32
    %314 = arith.addi %14, %313 : i32
    %315 = arith.index_cast %arg0 : i32 to index
    %316 = arith.index_cast %314 : i32 to index
    %317 = memref.load %arg2[%315, %316] : memref<4x32xi32, #tpu.memory_space<smem>>
    %c0_i32_106 = arith.constant 0 : i32
    %318 = arith.cmpi ne, %317, %c0_i32_106 : i32
    %cst_107 = arith.constant 0.000000e+00 : f32
    %319 = vector.broadcast %cst_107 : f32 to vector<2x16xf32>
    %320 = arith.select %318, %319, %305 : vector<2x16xf32>
    %cst_108 = arith.constant 0.000000e+00 : f32
    %321 = vector.broadcast %cst_108 : f32 to vector<2x16xf32>
    %322 = arith.select %318, %321, %303 : vector<2x16xf32>
    %c0_109 = arith.constant 0 : index
    %323 = arith.index_cast %313 : i32 to index
    %c0_110 = arith.constant 0 : index
    %c0_111 = arith.constant 0 : index
    %324 = vector.load %arg3[%c0_109, %323, %c0_110, %c0_111] : memref<1x8x2x64xf32, #tpu.memory_space<vmem>>, vector<1x1x2x64xf32>
    %325 = vector.shape_cast %324 : vector<1x1x2x64xf32> to vector<2x64xf32>
    %326 = arith.truncf %320 : vector<2x16xf32> to vector<2x16xbf16>
    %cst_112 = arith.constant dense<0.000000e+00> : vector<2x64xf32>
    %327 = tpu.matmul %326, %19, %cst_112 {dimension_numbers = #tpu.dot_dimension_numbers<[1], [0], [0], [1], [0, 0, 1, 1], [], []>} : vector<2x16xbf16>, vector<16x64xbf16>, vector<2x64xf32> -> vector<2x64xf32>
    %328 = arith.addf %325, %327 : vector<2x64xf32>
    %329 = vector.extract_strided_slice %328 {offsets = [0, 0], sizes = [2, 16], strides = [1, 1]} : vector<2x64xf32> to vector<2x16xf32>
    %330 = arith.negf %329 : vector<2x16xf32>
    %331 = math.exp %330 : vector<2x16xf32>
    %cst_113 = arith.constant 1.000000e+00 : f32
    %332 = vector.broadcast %cst_113 : f32 to vector<2x16xf32>
    %333 = arith.addf %332, %331 : vector<2x16xf32>
    %334 = arith.divf %332, %333 : vector<2x16xf32>
    %335 = vector.extract_strided_slice %328 {offsets = [0, 16], sizes = [2, 16], strides = [1, 1]} : vector<2x64xf32> to vector<2x16xf32>
    %336 = arith.negf %335 : vector<2x16xf32>
    %337 = math.exp %336 : vector<2x16xf32>
    %cst_114 = arith.constant 1.000000e+00 : f32
    %338 = vector.broadcast %cst_114 : f32 to vector<2x16xf32>
    %339 = arith.addf %338, %337 : vector<2x16xf32>
    %340 = arith.divf %338, %339 : vector<2x16xf32>
    %341 = vector.extract_strided_slice %328 {offsets = [0, 32], sizes = [2, 16], strides = [1, 1]} : vector<2x64xf32> to vector<2x16xf32>
    %342 = math.tanh %341 : vector<2x16xf32>
    %343 = vector.extract_strided_slice %328 {offsets = [0, 48], sizes = [2, 16], strides = [1, 1]} : vector<2x64xf32> to vector<2x16xf32>
    %344 = arith.negf %343 : vector<2x16xf32>
    %345 = math.exp %344 : vector<2x16xf32>
    %cst_115 = arith.constant 1.000000e+00 : f32
    %346 = vector.broadcast %cst_115 : f32 to vector<2x16xf32>
    %347 = arith.addf %346, %345 : vector<2x16xf32>
    %348 = arith.divf %346, %347 : vector<2x16xf32>
    %349 = arith.mulf %340, %322 : vector<2x16xf32>
    %350 = arith.mulf %334, %342 : vector<2x16xf32>
    %351 = arith.addf %349, %350 : vector<2x16xf32>
    %352 = math.tanh %351 : vector<2x16xf32>
    %353 = arith.mulf %348, %352 : vector<2x16xf32>
    %c0_116 = arith.constant 0 : index
    %354 = arith.index_cast %313 : i32 to index
    %c0_117 = arith.constant 0 : index
    %c0_118 = arith.constant 0 : index
    %355 = vector.load %arg5[%c0_116, %354, %c0_117, %c0_118] : memref<1x8x2x16xf32, #tpu.memory_space<vmem>>, vector<1x1x2x16xf32>
    %356 = vector.shape_cast %355 : vector<1x1x2x16xf32> to vector<2x16xf32>
    %357 = vector.shape_cast %353 : vector<2x16xf32> to vector<1x1x2x16xf32>
    tpu.vector_store %arg5[%c0_116, %354, %c0_117, %c0_118], %357 {strides = array<i32>} : memref<1x8x2x16xf32, #tpu.memory_space<vmem>>, vector<1x1x2x16xf32>,
    %c7_i32_119 = arith.constant 7 : i32
    %c2_i32_120 = arith.constant 2 : i32
    %358 = arith.muli %c2_i32_120, %c7_i32_119 : i32
    %c7_i32_121 = arith.constant 7 : i32
    %359 = arith.subi %c7_i32_121, %358 : i32
    %360 = arith.muli %9, %359 : i32
    %361 = arith.addi %c7_i32_119, %360 : i32
    %362 = arith.addi %14, %361 : i32
    %363 = arith.index_cast %arg0 : i32 to index
    %364 = arith.index_cast %362 : i32 to index
    %365 = memref.load %arg2[%363, %364] : memref<4x32xi32, #tpu.memory_space<smem>>
    %c0_i32_122 = arith.constant 0 : i32
    %366 = arith.cmpi ne, %365, %c0_i32_122 : i32
    %cst_123 = arith.constant 0.000000e+00 : f32
    %367 = vector.broadcast %cst_123 : f32 to vector<2x16xf32>
    %368 = arith.select %366, %367, %353 : vector<2x16xf32>
    %cst_124 = arith.constant 0.000000e+00 : f32
    %369 = vector.broadcast %cst_124 : f32 to vector<2x16xf32>
    %370 = arith.select %366, %369, %351 : vector<2x16xf32>
    %c0_125 = arith.constant 0 : index
    %371 = arith.index_cast %361 : i32 to index
    %c0_126 = arith.constant 0 : index
    %c0_127 = arith.constant 0 : index
    %372 = vector.load %arg3[%c0_125, %371, %c0_126, %c0_127] : memref<1x8x2x64xf32, #tpu.memory_space<vmem>>, vector<1x1x2x64xf32>
    %373 = vector.shape_cast %372 : vector<1x1x2x64xf32> to vector<2x64xf32>
    %374 = arith.truncf %368 : vector<2x16xf32> to vector<2x16xbf16>
    %cst_128 = arith.constant dense<0.000000e+00> : vector<2x64xf32>
    %375 = tpu.matmul %374, %19, %cst_128 {dimension_numbers = #tpu.dot_dimension_numbers<[1], [0], [0], [1], [0, 0, 1, 1], [], []>} : vector<2x16xbf16>, vector<16x64xbf16>, vector<2x64xf32> -> vector<2x64xf32>
    %376 = arith.addf %373, %375 : vector<2x64xf32>
    %377 = vector.extract_strided_slice %376 {offsets = [0, 0], sizes = [2, 16], strides = [1, 1]} : vector<2x64xf32> to vector<2x16xf32>
    %378 = arith.negf %377 : vector<2x16xf32>
    %379 = math.exp %378 : vector<2x16xf32>
    %cst_129 = arith.constant 1.000000e+00 : f32
    %380 = vector.broadcast %cst_129 : f32 to vector<2x16xf32>
    %381 = arith.addf %380, %379 : vector<2x16xf32>
    %382 = arith.divf %380, %381 : vector<2x16xf32>
    %383 = vector.extract_strided_slice %376 {offsets = [0, 16], sizes = [2, 16], strides = [1, 1]} : vector<2x64xf32> to vector<2x16xf32>
    %384 = arith.negf %383 : vector<2x16xf32>
    %385 = math.exp %384 : vector<2x16xf32>
    %cst_130 = arith.constant 1.000000e+00 : f32
    %386 = vector.broadcast %cst_130 : f32 to vector<2x16xf32>
    %387 = arith.addf %386, %385 : vector<2x16xf32>
    %388 = arith.divf %386, %387 : vector<2x16xf32>
    %389 = vector.extract_strided_slice %376 {offsets = [0, 32], sizes = [2, 16], strides = [1, 1]} : vector<2x64xf32> to vector<2x16xf32>
    %390 = math.tanh %389 : vector<2x16xf32>
    %391 = vector.extract_strided_slice %376 {offsets = [0, 48], sizes = [2, 16], strides = [1, 1]} : vector<2x64xf32> to vector<2x16xf32>
    %392 = arith.negf %391 : vector<2x16xf32>
    %393 = math.exp %392 : vector<2x16xf32>
    %cst_131 = arith.constant 1.000000e+00 : f32
    %394 = vector.broadcast %cst_131 : f32 to vector<2x16xf32>
    %395 = arith.addf %394, %393 : vector<2x16xf32>
    %396 = arith.divf %394, %395 : vector<2x16xf32>
    %397 = arith.mulf %388, %370 : vector<2x16xf32>
    %398 = arith.mulf %382, %390 : vector<2x16xf32>
    %399 = arith.addf %397, %398 : vector<2x16xf32>
    %400 = math.tanh %399 : vector<2x16xf32>
    %401 = arith.mulf %396, %400 : vector<2x16xf32>
    %c0_132 = arith.constant 0 : index
    %402 = arith.index_cast %361 : i32 to index
    %c0_133 = arith.constant 0 : index
    %c0_134 = arith.constant 0 : index
    %403 = vector.load %arg5[%c0_132, %402, %c0_133, %c0_134] : memref<1x8x2x16xf32, #tpu.memory_space<vmem>>, vector<1x1x2x16xf32>
    %404 = vector.shape_cast %403 : vector<1x1x2x16xf32> to vector<2x16xf32>
    %405 = vector.shape_cast %401 : vector<2x16xf32> to vector<1x1x2x16xf32>
    tpu.vector_store %arg5[%c0_132, %402, %c0_133, %c0_134], %405 {strides = array<i32>} : memref<1x8x2x16xf32, #tpu.memory_space<vmem>>, vector<1x1x2x16xf32>,
    %c8_i32_135 = arith.constant 8 : i32
    %c0_136 = arith.constant 0 : index
    %c0_137 = arith.constant 0 : index
    %406 = vector.load %arg6[%c0_136, %c0_137] : memref<2x16xf32, #tpu.memory_space<vmem>>, vector<2x16xf32>
    tpu.vector_store %arg6[%c0_136, %c0_137], %401 {strides = array<i32>} : memref<2x16xf32, #tpu.memory_space<vmem>>, vector<2x16xf32>,
    %c0_138 = arith.constant 0 : index
    %c0_139 = arith.constant 0 : index
    %407 = vector.load %arg7[%c0_138, %c0_139] : memref<2x16xf32, #tpu.memory_space<vmem>>, vector<2x16xf32>
    tpu.vector_store %arg7[%c0_138, %c0_139], %399 {strides = array<i32>} : memref<2x16xf32, #tpu.memory_space<vmem>>, vector<2x16xf32>,
    return
  }
  func.func @transform_0(%arg0: i32, %arg1: i32, %arg2: memref<4x32xi32, #tpu.memory_space<smem>>) -> (i32, i32, i32, i32) {
    %c2_i32 = arith.constant 2 : i32
    %c0_i32 = arith.constant 0 : i32
    %0 = arith.cmpi eq, %c2_i32, %c0_i32 : i32
    %c1_i32 = arith.constant 1 : i32
    %1 = arith.select %0, %c1_i32, %c2_i32 : i32
    %2 = arith.remsi %arg0, %1 : i32
    %c0_i32_0 = arith.constant 0 : i32
    %3 = arith.cmpi ne, %2, %c0_i32_0 : i32
    %c0_i32_1 = arith.constant 0 : i32
    %4 = arith.cmpi slt, %2, %c0_i32_1 : i32
    %c0_i32_2 = arith.constant 0 : i32
    %5 = arith.cmpi slt, %1, %c0_i32_2 : i32
    %6 = arith.xori %4, %5 : i1
    %7 = arith.andi %6, %3 : i1
    %8 = arith.addi %2, %1 : i32
    %9 = arith.select %7, %8, %2 : i32
    %c2_i32_3 = arith.constant 2 : i32
    %10 = arith.muli %c2_i32_3, %arg1 : i32
    %c3_i32 = arith.constant 3 : i32
    %11 = arith.subi %c3_i32, %10 : i32
    %12 = arith.muli %9, %11 : i32
    %13 = arith.addi %arg1, %12 : i32
    %c0_i32_4 = arith.constant 0 : i32
    %c0_i32_5 = arith.constant 0 : i32
    %c0_i32_6 = arith.constant 0 : i32
    return %arg0, %13, %c0_i32_4, %c0_i32_5 : i32, i32, i32, i32
  }
  func.func @transform_1(%arg0: i32, %arg1: i32, %arg2: memref<4x32xi32, #tpu.memory_space<smem>>) -> (i32, i32, i32) {
    %c0_i32 = arith.constant 0 : i32
    %c0_i32_0 = arith.constant 0 : i32
    %c0_i32_1 = arith.constant 0 : i32
    return %arg0, %c0_i32, %c0_i32_0 : i32, i32, i32
  }
  func.func @transform_2(%arg0: i32, %arg1: i32, %arg2: memref<4x32xi32, #tpu.memory_space<smem>>) -> (i32, i32, i32, i32) {
    %c2_i32 = arith.constant 2 : i32
    %c0_i32 = arith.constant 0 : i32
    %0 = arith.cmpi eq, %c2_i32, %c0_i32 : i32
    %c1_i32 = arith.constant 1 : i32
    %1 = arith.select %0, %c1_i32, %c2_i32 : i32
    %2 = arith.remsi %arg0, %1 : i32
    %c0_i32_0 = arith.constant 0 : i32
    %3 = arith.cmpi ne, %2, %c0_i32_0 : i32
    %c0_i32_1 = arith.constant 0 : i32
    %4 = arith.cmpi slt, %2, %c0_i32_1 : i32
    %c0_i32_2 = arith.constant 0 : i32
    %5 = arith.cmpi slt, %1, %c0_i32_2 : i32
    %6 = arith.xori %4, %5 : i1
    %7 = arith.andi %6, %3 : i1
    %8 = arith.addi %2, %1 : i32
    %9 = arith.select %7, %8, %2 : i32
    %c2_i32_3 = arith.constant 2 : i32
    %10 = arith.muli %c2_i32_3, %arg1 : i32
    %c3_i32 = arith.constant 3 : i32
    %11 = arith.subi %c3_i32, %10 : i32
    %12 = arith.muli %9, %11 : i32
    %13 = arith.addi %arg1, %12 : i32
    %c0_i32_4 = arith.constant 0 : i32
    %c0_i32_5 = arith.constant 0 : i32
    %c0_i32_6 = arith.constant 0 : i32
    return %arg0, %13, %c0_i32_4, %c0_i32_5 : i32, i32, i32, i32
  }
}

module attributes {stable_mosaic.version = 11 : i64} {
  func.func @_gate_tag_kernel(%arg0: i32, %arg1: memref<64x32xf32, #tpu.memory_space<vmem>>, %arg2: memref<64x32xf32, #tpu.memory_space<vmem>>, %arg3: memref<32x32xbf16, #tpu.memory_space<vmem>>, %arg4: memref<32x32xbf16, #tpu.memory_space<vmem>>, %arg5: memref<1x32xf32, #tpu.memory_space<vmem>>, %arg6: memref<32x128xbf16, #tpu.memory_space<vmem>>, %arg7: memref<1x128xf32, #tpu.memory_space<vmem>>, %arg8: memref<64x128xf32, #tpu.memory_space<vmem>>) attributes {dimension_semantics = [#tpu.dimension_semantics<parallel>], iteration_bounds = array<i64: 1>, scalar_prefetch = 0 : i64, scratch_operands = 0 : i64, tpu.core_type = #tpu.core_type<tc>, window_params = [{transform_indices = @transform_0, window_bounds = array<i64: 64, 32>}, {transform_indices = @transform_1, window_bounds = array<i64: 64, 32>}, {pipeline_mode = #tpu.pipeline_mode<synchronous>, transform_indices = @transform_2, window_bounds = array<i64: 32, 32>}, {pipeline_mode = #tpu.pipeline_mode<synchronous>, transform_indices = @transform_3, window_bounds = array<i64: 32, 32>}, {pipeline_mode = #tpu.pipeline_mode<synchronous>, transform_indices = @transform_4, window_bounds = array<i64: 1, 32>}, {pipeline_mode = #tpu.pipeline_mode<synchronous>, transform_indices = @transform_5, window_bounds = array<i64: 32, 128>}, {pipeline_mode = #tpu.pipeline_mode<synchronous>, transform_indices = @transform_6, window_bounds = array<i64: 1, 128>}, {transform_indices = @transform_7, window_bounds = array<i64: 64, 128>}]} {
    %c0 = arith.constant 0 : index
    %c0_0 = arith.constant 0 : index
    %0 = vector.load %arg1[%c0, %c0_0] : memref<64x32xf32, #tpu.memory_space<vmem>>, vector<64x32xf32>
    %c0_1 = arith.constant 0 : index
    %c0_2 = arith.constant 0 : index
    %1 = vector.load %arg2[%c0_1, %c0_2] : memref<64x32xf32, #tpu.memory_space<vmem>>, vector<64x32xf32>
    %2 = arith.truncf %0 : vector<64x32xf32> to vector<64x32xbf16>
    %c0_3 = arith.constant 0 : index
    %c0_4 = arith.constant 0 : index
    %3 = vector.load %arg3[%c0_3, %c0_4] : memref<32x32xbf16, #tpu.memory_space<vmem>>, vector<32x32xbf16>
    %cst = arith.constant dense<0.000000e+00> : vector<64x32xf32>
    %4 = tpu.matmul %2, %3, %cst {dimension_numbers = #tpu.dot_dimension_numbers<[1], [0], [0], [1], [0, 0, 1, 1], [], []>} : vector<64x32xbf16>, vector<32x32xbf16>, vector<64x32xf32> -> vector<64x32xf32>
    %5 = arith.truncf %1 : vector<64x32xf32> to vector<64x32xbf16>
    %c0_5 = arith.constant 0 : index
    %c0_6 = arith.constant 0 : index
    %6 = vector.load %arg4[%c0_5, %c0_6] : memref<32x32xbf16, #tpu.memory_space<vmem>>, vector<32x32xbf16>
    %cst_7 = arith.constant dense<0.000000e+00> : vector<64x32xf32>
    %7 = tpu.matmul %5, %6, %cst_7 {dimension_numbers = #tpu.dot_dimension_numbers<[1], [0], [0], [1], [0, 0, 1, 1], [], []>} : vector<64x32xbf16>, vector<32x32xbf16>, vector<64x32xf32> -> vector<64x32xf32>
    %8 = arith.addf %4, %7 : vector<64x32xf32>
    %c0_8 = arith.constant 0 : index
    %c0_9 = arith.constant 0 : index
    %9 = vector.load %arg5[%c0_8, %c0_9] : memref<1x32xf32, #tpu.memory_space<vmem>>, vector<1x32xf32>
    %10 = vector.broadcast %9 : vector<1x32xf32> to vector<64x32xf32>
    %11 = arith.addf %8, %10 : vector<64x32xf32>
    %12 = arith.negf %11 : vector<64x32xf32>
    %13 = math.exp %12 : vector<64x32xf32>
    %cst_10 = arith.constant 1.000000e+00 : f32
    %14 = vector.broadcast %cst_10 : f32 to vector<64x32xf32>
    %15 = arith.addf %14, %13 : vector<64x32xf32>
    %16 = arith.divf %14, %15 : vector<64x32xf32>
    %17 = arith.mulf %16, %0 : vector<64x32xf32>
    %cst_11 = arith.constant 1.000000e+00 : f32
    %18 = vector.broadcast %cst_11 : f32 to vector<64x32xf32>
    %19 = arith.subf %18, %16 : vector<64x32xf32>
    %20 = arith.mulf %19, %1 : vector<64x32xf32>
    %21 = arith.addf %17, %20 : vector<64x32xf32>
    %22 = arith.truncf %21 : vector<64x32xf32> to vector<64x32xbf16>
    %c0_12 = arith.constant 0 : index
    %c0_13 = arith.constant 0 : index
    %23 = vector.load %arg6[%c0_12, %c0_13] : memref<32x128xbf16, #tpu.memory_space<vmem>>, vector<32x128xbf16>
    %cst_14 = arith.constant dense<0.000000e+00> : vector<64x128xf32>
    %24 = tpu.matmul %22, %23, %cst_14 {dimension_numbers = #tpu.dot_dimension_numbers<[1], [0], [0], [1], [0, 0, 1, 1], [], []>} : vector<64x32xbf16>, vector<32x128xbf16>, vector<64x128xf32> -> vector<64x128xf32>
    %c0_15 = arith.constant 0 : index
    %c0_16 = arith.constant 0 : index
    %25 = vector.load %arg7[%c0_15, %c0_16] : memref<1x128xf32, #tpu.memory_space<vmem>>, vector<1x128xf32>
    %26 = vector.broadcast %25 : vector<1x128xf32> to vector<64x128xf32>
    %27 = arith.addf %24, %26 : vector<64x128xf32>
    %c0_17 = arith.constant 0 : index
    %c0_18 = arith.constant 0 : index
    %28 = vector.load %arg8[%c0_17, %c0_18] : memref<64x128xf32, #tpu.memory_space<vmem>>, vector<64x128xf32>
    tpu.vector_store %arg8[%c0_17, %c0_18], %27 {strides = array<i32>} : memref<64x128xf32, #tpu.memory_space<vmem>>, vector<64x128xf32>,
    return
  }
  func.func @transform_0(%arg0: i32) -> (i32, i32) {
    %c0_i32 = arith.constant 0 : i32
    %c0_i32_0 = arith.constant 0 : i32
    return %arg0, %c0_i32 : i32, i32
  }
  func.func @transform_1(%arg0: i32) -> (i32, i32) {
    %c0_i32 = arith.constant 0 : i32
    %c0_i32_0 = arith.constant 0 : i32
    return %arg0, %c0_i32 : i32, i32
  }
  func.func @transform_2(%arg0: i32) -> (i32, i32) {
    %c0_i32 = arith.constant 0 : i32
    %c0_i32_0 = arith.constant 0 : i32
    %c0_i32_1 = arith.constant 0 : i32
    return %c0_i32, %c0_i32_0 : i32, i32
  }
  func.func @transform_3(%arg0: i32) -> (i32, i32) {
    %c0_i32 = arith.constant 0 : i32
    %c0_i32_0 = arith.constant 0 : i32
    %c0_i32_1 = arith.constant 0 : i32
    return %c0_i32, %c0_i32_0 : i32, i32
  }
  func.func @transform_4(%arg0: i32) -> (i32, i32) {
    %c0_i32 = arith.constant 0 : i32
    %c0_i32_0 = arith.constant 0 : i32
    %c0_i32_1 = arith.constant 0 : i32
    return %c0_i32, %c0_i32_0 : i32, i32
  }
  func.func @transform_5(%arg0: i32) -> (i32, i32) {
    %c0_i32 = arith.constant 0 : i32
    %c0_i32_0 = arith.constant 0 : i32
    %c0_i32_1 = arith.constant 0 : i32
    return %c0_i32, %c0_i32_0 : i32, i32
  }
  func.func @transform_6(%arg0: i32) -> (i32, i32) {
    %c0_i32 = arith.constant 0 : i32
    %c0_i32_0 = arith.constant 0 : i32
    %c0_i32_1 = arith.constant 0 : i32
    return %c0_i32, %c0_i32_0 : i32, i32
  }
  func.func @transform_7(%arg0: i32) -> (i32, i32) {
    %c0_i32 = arith.constant 0 : i32
    %c0_i32_0 = arith.constant 0 : i32
    return %arg0, %c0_i32 : i32, i32
  }
}

</mosaic_0001>

<bundles_post_ra>
// kernel: word_sequence_forward.3
= control target key start
LH: loop header
LB: loop body
LE: loop exit
PB: predicated region body
PF: predicated region fallthrough
CT: control target
= control target key end

     0   :  { %vm71_vm0 = vcmask 261120   ;;  %s838_s3 = inlined_call_operand.vmem [shape: bf16[32,32], index: 3, kind: input, shape index: {}]   ;;  %s839_s2 = inlined_call_operand.vmem [shape: bf16[32,32], index: 2, kind: input, shape index: {}]   ;;  %s840_s1 = inlined_call_operand.vmem [shape: f32[64,32], index: 1, kind: input, shape index: {}]   ;;  %s841_s0 = inlined_call_operand.vmem [shape: f32[64,32], index: 0, kind: input, shape index: {}]   ;;  %s842_s4 = inlined_call_operand.vmem [shape: f32[1,32], index: 4, kind: input, shape index: {}]   ;;  %s843_s6 = inlined_call_operand.vmem [shape: f32[1,128], index: 6, kind: input, shape index: {}]   ;;  %s844_s5 = inlined_call_operand.vmem [shape: bf16[32,128], index: 5, kind: input, shape index: {}]   ;;  %s845_s7 = inlined_call_operand.vmem [shape: f32[64,128], index: 7, kind: output, shape index: {}]  }
   0x1   :  { %v486_v0 = vld [vmem:[%s838_s3 + $0x8] sm:$0xff]  ;;  %v485_v2 = vld [vmem:[%s838_s3] sm:$0xff]  ;;  %v591_v5 = vld [vmem:[%s840_s1 + $0x10] sm:$0xff] }
   0x2   :  { %v484_v1 = vld [vmem:[%s839_s2 + $0x8] sm:$0xff]  ;;  %v581_v3 = vld [vmem:[%s840_s1] sm:$0xff]  ;;  %90 = vmatpush.bf16.msra.mxu0 %v486_v0  ;;  %489 = vmatpush.bf16.msra.mxu3 %v486_v0  ;;  %v596_v6 = vld [vmem:[%s840_s1 + $0x18] sm:$0xff] }
   0x3   :  { %v586_v4 = vld [vmem:[%s840_s1 + $0x8] sm:$0xff]  ;;  %491 = vmatpush.bf16.msra.mxu1 %v484_v1  ;;  %v483_v7 = vld [vmem:[%s839_s2] sm:$0xff]  ;;  %v604_v8 = vld [vmem:[%s841_s0 + $0x10] sm:$0xff]  ;;  %v52_v11 = vpack.c.bf16 %v596_v6, %v591_v5 }
   0x4   :  { %v609_v9 = vld [vmem:[%s841_s0 + $0x18] sm:$0xff]  ;;  %v51_v10 = vpack.c.bf16 %v586_v4, %v581_v3  ;;  %v623_v13 = vld [vmem:[%s840_s1 + $0x20] sm:$0xff]  ;;  %v628_v14 = vld [vmem:[%s840_s1 + $0x28] sm:$0xff] }
   0x5   :  { %v44_v12 = vpack.c.bf16 %v609_v9, %v604_v8  ;;  %v633_v15 = vld [vmem:[%s841_s0] sm:$0xff]  ;;  %v638_v16 = vld [vmem:[%s841_s0 + $0x8] sm:$0xff]  ;;  %v53_v19 = vpack.c.bf16 %v628_v14, %v623_v13  ;;  %v662_v22 = vld [vmem:[%s840_s1 + $0x30] sm:$0xff] }
   0x6   :  { %91 = vmatpush.bf16.msra.mxu0 %v485_v2  ;;  %490 = vmatpush.bf16.msra.mxu3 %v485_v2  ;;  %v643_v17 = vld [vmem:[%s841_s0 + $0x20] sm:$0xff]  ;;  %v648_v18 = vld [vmem:[%s841_s0 + $0x28] sm:$0xff]  ;;  %v43_v20 = vpack.c.bf16 %v638_v16, %v633_v15  ;;  %v667_v23 = vld [vmem:[%s840_s1 + $0x38] sm:$0xff] }
   0x7   :  { %492 = vmatpush.bf16.msra.mxu1 %v483_v7  ;;  %v45_v21 = vpack.c.bf16 %v648_v18, %v643_v17  ;;  %v672_v24 = vld [vmem:[%s841_s0 + $0x30] sm:$0xff]  ;;  %v677_v25 = vld [vmem:[%s841_s0 + $0x38] sm:$0xff]  ;;  %v54_v26 = vpack.c.bf16 %v667_v23, %v662_v22  ;;  %v688_v30 = vld [vmem:[%s842_s4] ss:$0 sm:$0xff] }
   0x8   :  { %v46_v27 = vpack.c.bf16 %v677_v25, %v672_v24  ;;  %v488_v39 = vld [vmem:[%s844_s5 + $0x8] sm:$0xff]  ;;  %v487_v47 = vld [vmem:[%s844_s5] sm:$0xff] }
   0x9   :  { %447 = vmatmul.msk.bf16.vlgmr.msra.gmra.mxu0 %vm71_vm0, %v51_v10  ;;  %448 = vmatmul.msk.bf16.vlgmr.msra.gmra.mxu3 %vm71_vm0, %v52_v11 }
   0xa   :  { %143 = vmatpush.bf16.msrb.mxu0 %v484_v1  ;;  %460 = vmatmul.msk.bf16.vlgmr.msra.gmra.mxu1 %vm71_vm0, %v44_v12 }
   0xb   :  { %493 = vmatpush.bf16.msra.mxu2 %v488_v39 }
   0xe   :  { %144 = vmatpush.bf16.msrb.mxu0 %v483_v7 }
   0xf   :  { %494 = vmatpush.bf16.msra.mxu2 %v487_v47 }
  0x12   :  { %404 = vmatpush.bf16.msra.mxu0 %v488_v39 }
  0x16   :  { %405 = vmatpush.bf16.msra.mxu0 %v487_v47 }
  0x19   :  { %449 = vmatmul.msk.bf16.gmra.mxu3 %vm71_vm0, %v53_v19  ;;  %459 = vmatmul.msk.bf16.vlgmr.msrb.gmra.mxu0 %vm71_vm0, %v43_v20 }
  0x1a   :  { %461 = vmatmul.msk.bf16.gmra.mxu1 %vm71_vm0, %v45_v21 }
  0x29   :  { %450 = vmatmul.msk.bf16.gmra.mxu3 %vm71_vm0, %v54_v26 }
  0x2a   :  { %462 = vmatmul.msk.bf16.gmra.mxu1 %vm71_vm0, %v46_v27 }
  0x86   :  { %v93_v28 = vpop.f32.mrf.mxu0 }
  0x87   :  { %v151_v29 = vpop.f32.mrf.mxu1 }
  0x8c   :  { %v98_v31 = vpop.f32.mrf.mxu3 }
  0x8d   :  { %v152_v32 = vadd.f32 %v151_v29, %v98_v31 }
  0x8e   :  { %v95_v33 = vpop.f32.mrf.mxu0 }
  0x8f   :  { %v172_v34 = vadd.f32 %v688_v30, %v152_v32  ;;  %v153_v35 = vpop.f32.mrf.mxu1 }
  0x91   :  { %v465_v36 = vmul.f32 -1.442695, %v172_v34 }
  0x93   :  { %497 = vpow2.f32 %v465_v36 }
  0x94   :  { %v100_v37 = vpop.f32.mrf.mxu3 }
  0x95   :  { %v154_v38 = vadd.f32 %v153_v35, %v100_v37 }
  0x96   :  { %v146_v40 = vpop.f32.mrf.mxu0 }
  0x97   :  { %v173_v41 = vadd.f32 %v688_v30, %v154_v38  ;;  %v147_v42 = vadd.f32 %v146_v40, %v93_v28  ;;  %v156_v43 = vpop.f32.mrf.mxu1 }
  0x99   :  { %v498_v44 = vpop.eup %497  ;;  %v466_v45 = vmul.f32 -1.442695, %v173_v41  ;;  %v170_v46 = vadd.f32 %v688_v30, %v147_v42 }
  0x9a   :  { %v204_v48 = vadd.f32 1.0, %v498_v44 }
  0x9b   :  { %499 = vpow2.f32 %v466_v45  ;;  %v463_v49 = vmul.f32 -1.442695, %v170_v46 }
  0x9c   :  { %501 = vrcp.f32 %v204_v48  ;;  %v103_v50 = vpop.f32.mrf.mxu3  ;;  %v249_v10 = vand.u32 2147483647, %v204_v48  ;;  %v251_v19 = vand.u32 2147483648, %v204_v48  ;;  %vm245_vm2 = vweird.f32 %v204_v48 }
  0x9d   :  { %503 = vpow2.f32 %v463_v49  ;;  %v157_v51 = vadd.f32 %v156_v43, %v103_v50 }
  0x9e   :  { %v148_v52 = vpop.f32.mrf.mxu0  ;;  %vm704_vm3 = vcmp.eq.f32.partialorder %v249_v10, 8.507059e+37  ;;  %v252_v35 = vor.u32 1.1754944e-38, %v251_v19 }
  0x9f   :  { %v174_v53 = vadd.f32 %v688_v30, %v157_v51  ;;  %v149_v54 = vadd.f32 %v148_v52, %v95_v33  ;;  %v158_v55 = vpop.f32.mrf.mxu1 }
  0xa1   :  { %v500_v56 = vpop.eup %499  ;;  %v467_v57 = vmul.f32 -1.442695, %v174_v53  ;;  %v171_v58 = vadd.f32 %v688_v30, %v149_v54 }
  0xa2   :  { %v502_v59 = vpop.eup %501  ;;  %v205_v60 = vadd.f32 1.0, %v500_v56 }
  0xa3   :  { %v504_v61 = vpop.eup %503  ;;  %v241_v62 = vmul.f32 %v502_v59, %v204_v48  ;;  %505 = vpow2.f32 %v467_v57  ;;  %v464_v63 = vmul.f32 -1.442695, %v171_v58  ;;  %vm246_vm1 = vweird.f32 %v502_v59 }
  0xa4   :  { %507 = vrcp.f32 %v205_v60  ;;  %v202_v0 = vadd.f32 1.0, %v504_v61  ;;  %v105_v1 = vpop.f32.mrf.mxu3  ;;  %vm708_vm4 = vmor %vm245_vm2, %vm246_vm1  ;;  %v264_v36 = vand.u32 2147483647, %v205_v60  ;;  %v266_v41 = vand.u32 2147483648, %v205_v60 }
  0xa5   :  { %v242_v2 = vsub.f32 1.0, %v241_v62  ;;  %509 = vpow2.f32 %v464_v63  ;;  %v159_v7 = vadd.f32 %v158_v55, %v105_v1  ;;  %vm260_vm5 = vweird.f32 %v205_v60 }
  0xa6   :  { %511 = vrcp.f32 %v202_v0  ;;  %v219_v44 = vand.u32 2147483647, %v202_v0  ;;  %v221_v46 = vand.u32 2147483648, %v202_v0  ;;  %vm215_vm7 = vweird.f32 %v202_v0 }
  0xa7   :  { %v175_v11 = vadd.f32 %v688_v30, %v159_v7  ;;  %v243_v12 = vmul.f32 %v502_v59, %v242_v2  ;;  %v161_v29 = vpop.f32.mrf.mxu1  ;;  %vm721_vm9 = vcmp.eq.f32.partialorder %v264_v36, 8.507059e+37  ;;  %v267_v52 = vor.u32 1.1754944e-38, %v266_v41 }
  0xa8   :  { %vm725_vm10 = vcmp.eq.f32.partialorder %v219_v44, 8.507059e+37 }
  0xa9   :  { %v506_v20 = vpop.eup %505  ;;  %v468_v21 = vmul.f32 -1.442695, %v175_v11  ;;  %v244_v26 = vadd.f32 %v502_v59, %v243_v12 }
  0xaa   :  { %v508_v27 = vpop.eup %507  ;;  %v702_v28 = vadd.f32 1.0, %v506_v20 }
  0xab   :  { %v510_v32 = vpop.eup %509  ;;  %v256_v33 = vmul.f32 %v508_v27, %v205_v60  ;;  %513 = vpow2.f32 %v468_v21  ;;  %v248_v40 = vsel %vm708_vm4, %v502_v59, %v244_v26  ;;  %vm261_vm6 = vweird.f32 %v508_v27 }
  0xac   :  { %v512_v37 = vpop.eup %511  ;;  %515 = vrcp.f32 %v702_v28  ;;  %v713_v38 = vadd.f32 1.0, %v510_v32  ;;  %v108_v39 = vpop.f32.mrf.mxu3  ;;  %v253_v49 = vsel %vm704_vm3, %v252_v35, %v248_v40  ;;  %v222_v59 = vor.u32 1.1754944e-38, %v221_v46  ;;  %vm735_vm11 = vmor %vm260_vm5, %vm261_vm6 }
  0xad   :  { %v257_v42 = vsub.f32 1.0, %v256_v33  ;;  %v211_v43 = vmul.f32 %v512_v37, %v202_v0  ;;  %v162_v45 = vadd.f32 %v161_v29, %v108_v39  ;;  %vm216_vm8 = vweird.f32 %v512_v37 }
  0xae   :  { %517 = vrcp.f32 %v713_v38  ;;  %v340_v63 = vsub.f32 1.0, %v253_v49  ;;  %vm275_vm12 = vweird.f32 %v702_v28  ;;  %vm742_vm13 = vmor %vm215_vm7, %vm216_vm8  ;;  %vm230_vm14 = vweird.f32 %v713_v38 }
  0xaf   :  { %v212_v47 = vsub.f32 1.0, %v211_v43  ;;  %v176_v48 = vadd.f32 %v688_v30, %v162_v45  ;;  %v258_v50 = vmul.f32 %v508_v27, %v257_v42  ;;  %v234_v11 = vand.u32 2147483647, %v713_v38  ;;  %v163_v0 = vpop.f32.mrf.mxu1 }
  0xb0   :  { %v236_v12 = vand.u32 2147483648, %v713_v38  ;;  %v332_v31 = vmul.f32 %v253_v49, %v604_v8  ;;  %v279_v41 = vand.u32 2147483647, %v702_v28 }
  0xb1   :  { %v514_v53 = vpop.eup %513  ;;  %v213_v54 = vmul.f32 %v512_v37, %v212_v47  ;;  %v469_v56 = vmul.f32 -1.442695, %v176_v48  ;;  %v259_v57 = vadd.f32 %v508_v27, %v258_v50  ;;  %vm235_vm4 = vcmp.eq.f32.partialorder %v234_v11, 8.507059e+37 }
  0xb2   :  { %v729_v58 = vpop.eup %515  ;;  %v731_v61 = vadd.f32 1.0, %v514_v53  ;;  %v237_v51 = vor.u32 1.1754944e-38, %v236_v12  ;;  %vm280_vm5 = vcmp.eq.f32.partialorder %v279_v41, 8.507059e+37 }
  0xb3   :  { %v214_v1 = vadd.f32 %v512_v37, %v213_v54  ;;  %v271_v7 = vmul.f32 %v729_v58, %v702_v28  ;;  %519 = vpow2.f32 %v469_v56  ;;  %v263_v60 = vsel %vm735_vm11, %v508_v27, %v259_v57 }
  0xb4   :  { %v518_v10 = vpop.eup %517  ;;  %521 = vrcp.f32 %v731_v61  ;;  %v110_v19 = vpop.f32.mrf.mxu3  ;;  %v268_v20 = vsel %vm721_vm9, %v267_v52, %v263_v60  ;;  %v348_v27 = vmul.f32 %v340_v63, %v591_v5  ;;  %vm276_vm15 = vweird.f32 %v729_v58 }
  0xb5   :  { %v272_v21 = vsub.f32 1.0, %v271_v7  ;;  %v226_v26 = vmul.f32 %v518_v10, %v713_v38  ;;  %v164_v29 = vadd.f32 %v163_v0, %v110_v19  ;;  %v341_v32 = vsub.f32 1.0, %v268_v20  ;;  %vm777_vm2 = vmor %vm275_vm12, %vm276_vm15 }
  0xb6   :  { %v218_v33 = vsel %vm742_vm13, %v512_v37, %v214_v1  ;;  %v333_v40 = vmul.f32 %v268_v20, %v609_v9  ;;  %v281_v5 = vand.u32 2147483648, %v702_v28  ;;  %vm231_vm1 = vweird.f32 %v518_v10 }
  0xb7   :  { %v227_v34 = vsub.f32 1.0, %v226_v26  ;;  %v177_v35 = vadd.f32 %v688_v30, %v164_v29  ;;  %v223_v36 = vsel %vm725_vm10, %v222_v59, %v218_v33  ;;  %v273_v39 = vmul.f32 %v729_v58, %v272_v21  ;;  %vm232_vm3 = vmor %vm230_vm14, %vm231_vm1 }
  0xb8   :  { %v349_v8 = vmul.f32 %v341_v32, %v596_v6  ;;  %v356_v46 = vadd.f32 %v348_v27, %v332_v31  ;;  %v338_v48 = vsub.f32 1.0, %v223_v36  ;;  %v282_v28 = vor.u32 1.1754944e-38, %v281_v5 }
  0xb9   :  { %v520_v42 = vpop.eup %519  ;;  %v228_v37 = vmul.f32 %v518_v10, %v227_v34  ;;  %v470_v43 = vmul.f32 -1.442695, %v177_v35  ;;  %v274_v44 = vadd.f32 %v729_v58, %v273_v39  ;;  %v294_v62 = vand.u32 2147483647, %v731_v61 }
  0xba   :  { %v522_v30 = vpop.eup %521  ;;  %v771_v45 = vadd.f32 1.0, %v520_v42  ;;  %v357_v47 = vadd.f32 %v349_v8, %v333_v40  ;;  %v346_v56 = vmul.f32 %v338_v48, %v581_v3  ;;  %v330_v63 = vmul.f32 %v223_v36, %v633_v15 }
  0xbb   :  { %v229_v9 = vadd.f32 %v518_v10, %v228_v37  ;;  %v286_v49 = vmul.f32 %v522_v30, %v731_v61  ;;  %523 = vpow2.f32 %v470_v43  ;;  %v278_v50 = vsel %vm777_vm2, %v729_v58, %v274_v44 }
  0xbc   :  { %525 = vrcp.f32 %v771_v45  ;;  %v363_v52 = vpack.c.bf16 %v357_v47, %v356_v46  ;;  %v283_v57 = vsel %vm280_vm5, %v282_v28, %v278_v50  ;;  %v296_v58 = vand.u32 2147483648, %v731_v61  ;;  %v496_v28 = vld [vmem:[%s843_s6] ss:$0 sm:$0xff] }
  0xbd   :  { %v287_v53 = vsub.f32 1.0, %v286_v49  ;;  %v233_v54 = vsel %vm232_vm3, %v518_v10, %v229_v9  ;;  %vm291_vm6 = vweird.f32 %v522_v30  ;;  %vm290_vm7 = vweird.f32 %v731_v61 }
  0xbe   :  { %480 = vmatmul.msk.bf16.vlgmr.msra.gmra.mxu2 %vm71_vm0, %v363_v52  ;;  %v238_v55 = vsel %vm235_vm4, %v237_v51, %v233_v54  ;;  %v342_v10 = vsub.f32 1.0, %v283_v57  ;;  %v354_v12 = vadd.f32 %v346_v56, %v330_v63  ;;  %vm292_vm8 = vmor %vm290_vm7, %vm291_vm6  ;;  %v297_v0 = vor.u32 1.1754944e-38, %v296_v58 }
  0xbf   :  { %v339_v59 = vsub.f32 1.0, %v238_v55  ;;  %v288_v38 = vmul.f32 %v522_v30, %v287_v53  ;;  %v331_v2 = vmul.f32 %v238_v55, %v638_v16  ;;  %vm295_vm9 = vcmp.eq.f32.partialorder %v294_v62, 8.507059e+37 }
  0xc0   :  { %v350_v16 = vmul.f32 %v342_v10, %v623_v13  ;;  %vm305_vm11 = vweird.f32 %v771_v45  ;;  %v311_v33 = vand.u32 2147483648, %v771_v45  ;;  %v309_v39 = vand.u32 2147483647, %v771_v45 }
  0xc1   :  { %v524_v1 = vpop.eup %523  ;;  %v347_v7 = vmul.f32 %v339_v59, %v586_v4  ;;  %v289_v60 = vadd.f32 %v522_v30, %v288_v38  ;;  %v334_v4 = vmul.f32 %v283_v57, %v643_v17 }
  0xc2   :  { %v526_v3 = vpop.eup %525  ;;  %v209_v11 = vadd.f32 1.0, %v524_v1  ;;  %v312_v41 = vor.u32 1.1754944e-38, %v311_v33  ;;  %vm310_vm13 = vcmp.eq.f32.partialorder %v309_v39, 8.507059e+37 }
  0xc3   :  { %v301_v19 = vmul.f32 %v526_v3, %v771_v45  ;;  %v355_v20 = vadd.f32 %v347_v7, %v331_v2  ;;  %v293_v21 = vsel %vm292_vm8, %v522_v30, %v289_v60  ;;  %vm306_vm10 = vweird.f32 %v526_v3 }
  0xc4   :  { %527 = vrcp.f32 %v209_v11  ;;  %v298_v15 = vsel %vm295_vm9, %v297_v0, %v293_v21  ;;  %v358_v34 = vadd.f32 %v350_v16, %v334_v4  ;;  %vm307_vm12 = vmor %vm305_vm11, %vm306_vm10  ;;  %v326_v5 = vand.u32 2147483648, %v209_v11 }
  0xc5   :  { %v302_v61 = vsub.f32 1.0, %v301_v19  ;;  %v362_v26 = vpack.c.bf16 %v355_v20, %v354_v12  ;;  %v343_v29 = vsub.f32 1.0, %v298_v15  ;;  %v335_v31 = vmul.f32 %v298_v15, %v648_v18 }
  0xc6   :  { %v324_v37 = vand.u32 2147483647, %v209_v11  ;;  %vm320_vm15 = vweird.f32 %v209_v11  ;;  %v327_v30 = vor.u32 1.1754944e-38, %v326_v5 }
  0xc7   :  { %479 = vmatmul.msk.bf16.vlgmr.msra.gmra.mxu0 %vm71_vm0, %v362_v26  ;;  %v351_v32 = vmul.f32 %v343_v29, %v628_v14  ;;  %v303_v27 = vmul.f32 %v526_v3, %v302_v61 }
  0xc8   :  { %vm325_vm2 = vcmp.eq.f32.partialorder %v324_v37, 8.507059e+37 }
  0xc9   :  { %v359_v35 = vadd.f32 %v351_v32, %v335_v31  ;;  %v304_v36 = vadd.f32 %v526_v3, %v303_v27 }
  0xca   :  { %v528_v13 = vpop.eup %527 }
  0xcb   :  { %v316_v17 = vmul.f32 %v528_v13, %v209_v11  ;;  %v364_v40 = vpack.c.bf16 %v359_v35, %v358_v34  ;;  %v308_v8 = vsel %vm307_vm12, %v526_v3, %v304_v36  ;;  %vm321_vm14 = vweird.f32 %v528_v13 }
  0xcc   :  { %v313_v14 = vsel %vm310_vm13, %v312_v41, %v308_v8  ;;  %vm322_vm1 = vmor %vm320_vm15, %vm321_vm14 }
  0xcd   :  { %v317_v18 = vsub.f32 1.0, %v316_v17  ;;  %v344_v44 = vsub.f32 1.0, %v313_v14  ;;  %v336_v6 = vmul.f32 %v313_v14, %v672_v24 }
  0xce   :  { %481 = vmatmul.msk.bf16.gmra.mxu2 %vm71_vm0, %v364_v40 }
  0xcf   :  { %v318_v42 = vmul.f32 %v528_v13, %v317_v18  ;;  %v352_v48 = vmul.f32 %v344_v44, %v662_v22 }
  0xd1   :  { %v319_v43 = vadd.f32 %v528_v13, %v318_v42  ;;  %v360_v50 = vadd.f32 %v352_v48, %v336_v6 }
  0xd3   :  { %v323_v45 = vsel %vm322_vm1, %v528_v13, %v319_v43 }
  0xd4   :  { %v328_v46 = vsel %vm325_vm2, %v327_v30, %v323_v45 }
  0xd5   :  { %v345_v47 = vsub.f32 1.0, %v328_v46  ;;  %v337_v9 = vmul.f32 %v328_v46, %v677_v25 }
  0xd7   :  { %v353_v49 = vmul.f32 %v345_v47, %v667_v23 }
  0xd9   :  { %v361_v51 = vadd.f32 %v353_v49, %v337_v9 }
  0xdb   :  { %v365_v52 = vpack.c.bf16 %v361_v51, %v360_v50 }
  0xde   :  { %482 = vmatmul.msk.bf16.gmra.mxu2 %vm71_vm0, %v365_v52 }
 0x141   :  { %v412_v53 = vpop.f32.mrf.mxu2 }
 0x142   :  { %v413_v54 = vadd.f32 %v496_v28, %v412_v53 }
 0x144   :  { %429 = vst [vmem:[%s845_s7 + $0x10] sm:$0xff] %v413_v54  ;;  %v407_v22 = vpop.f32.mrf.mxu0 }
 0x145   :  { %v408_v24 = vadd.f32 %v496_v28, %v407_v22 }
 0x147   :  { %427 = vst [vmem:[%s845_s7] sm:$0xff] %v408_v24 }
 0x149   :  { %v414_v23 = vpop.f32.mrf.mxu2 }
 0x14a   :  { %v415_v25 = vadd.f32 %v496_v28, %v414_v23 }
 0x14c   :  { %430 = vst [vmem:[%s845_s7 + $0x18] sm:$0xff] %v415_v25  ;;  %v409_v55 = vpop.f32.mrf.mxu0 }
 0x14d   :  { %v410_v56 = vadd.f32 %v496_v28, %v409_v55 }
 0x14f   :  { %428 = vst [vmem:[%s845_s7 + $0x8] sm:$0xff] %v410_v56 }
 0x151   :  { %v417_v57 = vpop.f32.mrf.mxu2 }
 0x152   :  { %v418_v58 = vadd.f32 %v496_v28, %v417_v57 }
 0x154   :  { %431 = vst [vmem:[%s845_s7 + $0x20] sm:$0xff] %v418_v58 }
 0x159   :  { %v419_v59 = vpop.f32.mrf.mxu2 }
 0x15a   :  { %v420_v38 = vadd.f32 %v496_v28, %v419_v59 }
 0x15c   :  { %432 = vst [vmem:[%s845_s7 + $0x28] sm:$0xff] %v420_v38 }
 0x161   :  { %v422_v62 = vpop.f32.mrf.mxu2 }
 0x162   :  { %v423_v63 = vadd.f32 %v496_v28, %v422_v62 }
 0x164   :  { %433 = vst [vmem:[%s845_s7 + $0x30] sm:$0xff] %v423_v63 }
 0x169   :  { %v424_v1 = vpop.f32.mrf.mxu2 }
 0x16a   :  { %v425_v2 = vadd.f32 %v496_v28, %v424_v1 }
 0x16c   :  { %434 = vst [vmem:[%s845_s7 + $0x38] sm:$0xff] %v425_v2 }

// kernel: word_sequence_forward.2
= control target key start
LH: loop header
LB: loop body
LE: loop exit
PB: predicated region body
PF: predicated region fallthrough
CT: control target
= control target key end

     0   :  { %s1587_s15 = smov [#allocation5]   ;;  %s1923_s0 = inlined_call_operand.vmem [shape: s32[4,32], index: 0, kind: input, shape index: {}]   ;;  %s1924_s1 = inlined_call_operand.vmem [shape: f32[4,32,2,64], index: 1, kind: input, shape index: {}]   ;;  %s1925_s2 = inlined_call_operand.vmem [shape: bf16[4,16,64], index: 2, kind: input, shape index: {}]   ;;  %s1926_s3 = inlined_call_operand.vmem [shape: f32[4,32,2,16], index: 3, kind: output, shape index: {}]  }
   0x1   :  { %s9_s14 = sshll.u32 %s1923_s0, 4  ;;  %s10_s14 = int_to_ptr.vmem [resolvable:$true] %s9_s14 }
   0x2   :  { %12 = dma.vmem_to_smem %s10_s14, 64, %s1587_s15, [#allocation4] }
   0x3   :  { %1565 = dma.done.wait [#allocation4], 64 }
   0x4   :  { %1566 = vsyncadd [#allocation4], 4294967232 }
   0x5   :  { %15 = sfence }
   0x6   :  { %s1617_s16 = smov 0   ;;  %s1619_s17 = smov 0  }
   0x7   :  { %s1621_s18 = smov 0   ;;  %s1623_s19 = smov 0  }
   0x8   :  { %s1625_s20 = smov 0  }
   0x9 LB: > { %s30_s0 = sadd.s32 1, %s1577_s18  ;;  %s33_s21 = sadd.s32 1, %s1581_s19  ;;  %s1585_s20 = sphi %s1625_s20, %s21_s20   ;;  %s1581_s19 = sphi %s1623_s19, %s1952_s19   ;;  %s1577_s18 = sphi %s1621_s18, %s1951_s18   ;;  %s1573_s17 = sphi %s1619_s17, %s1950_s17   ;;  %s1569_s16 = sphi %s1617_s16, %s1949_s16  }
   0xa   : > { %p31_p0 = scmp.ge.s32.totalorder %s30_s0, 4  ;;  %p1341_p1 = scmp.ge.s32.totalorder %s1585_s20, 1 }
   0xb   : > { %p248_p2 = scmp.lt.s32.totalorder %s1585_s20, 17 }
   0xc   : > { %s1954_s0 = smov (%p31_p0, %s30_s0), 0  ;;  %s1956_s21 = smov (!%p31_p0, %s33_s21), %s1581_s19 }
   0xd   : > { %p249_p3 = pnand %p1341_p1, %p248_p2  ;;  %p35_p4 = scmp.ge.s32.totalorder %s1956_s21, 4 }
   0xe   : > { %p315_p5 = scmp.lt.s32.totalorder (!%p249_p3), %s1573_s17, 0  ;;  %s316_s22 = ssub.s32 (!%p249_p3), 0, %s1573_s17 }
   0xf   : > { %s1958_s21 = smov (%p35_p4, %s1956_s21), 0  ;;  %252 = sbr.rel (%p249_p3) target bundleno = 4733 (0x127d), region = 28 }
  0x10   : > { %s1342_s23 = smin.u32 (!%p249_p3), %s1573_s17, %s316_s22  ;;  %s1345_s25 = sshll.u32 (!%p249_p3), %s1569_s16, 1 }
  0x11   : > { %s318_s24 = sand.u32 (!%p249_p3), 1, %s1342_s23   ;;  %p332_p6 = scmp.lt.s32.totalorder (!%p249_p3), %s1573_s17, 3 }
  0x12   : > { %s319_s26 = ssub.s32 (!%p249_p3), 0, %s318_s24  ;;  %s328_s29 = ssub.s32 (!%p249_p3), 3, %s1345_s25 }
  0x13   : > { %p1363_p9 = scmp.ne.s32.totalorder (!%p249_p3), %s1569_s16, 0 }
  0x14   : > { %s1960_s26 = smov (!%p315_p5, %s319_s26), %s318_s24 }
  0x15   : > { %s333_s27 = scalar_select %p332_p6, %s1573_s17, 3 }
  0x16   : > { %p1344_p7 = scmp.lt.s32.totalorder %s1960_s26, 0  ;;  %s325_s28 = sadd.s32 2, %s1960_s26 }
  0x17   : > { %s1420_s30 = sshll.u32 %s333_s27, 3  ;;  %s1347_s10 = sshll.u32 %s333_s27, 5 }
  0x18   : > { %s1962_s28 = smov (!%p1344_p7, %s325_s28), %s1960_s26  ;;  %s361_s6 = scalar_lea.vmem %s1925_s2, %s1420_s30 }
  0x19   : > { %s329_s7 = smul.u32 %s328_s29, %s1962_s28 }
  0x1b   : > { %s330_s8 = sadd.s32 %s1569_s16, %s329_s7 }
  0x1c   : > { %s1664_s9 = sshll.u32 %s330_s8, 3 }
  0x1d   : > { %p334_p8 = scmp.lt.s32.totalorder %s1664_s9, 31 }
  0x1f   : > { %s335_s11 = scalar_select %p334_p8, %s1664_s9, 31 }
  0x20   : > { %425 = sbr.rel (%p1363_p9) target bundleno = 40 (0x28), region = 32 }
  0x21   : > { %s337_s12 = sadd.s32 %s1347_s10, %s335_s11 }
  0x22   : > { %s1348_s13 = sshll.u32 %s337_s12, 1 }
  0x23   : > { %s1671_s22 = scalar_lea.vmem %s1924_s1, %s1348_s13  ;;  %s1676_s25 = scalar_lea.vmem %s1926_s3, %s1348_s13 }
  0x25   : > { %vm426_vm0 = vcmask 123904   ;;  %v1588_v0 = vmov 0.0  }
  0x26   : > { %427 = vst.msk [vmem:[#allocation2] sm:$0x3] %vm426_vm0, %v1588_v0 }
  0x27   : > { %428 = vst.msk [vmem:[#allocation3] sm:$0x3] %vm426_vm0, %v1588_v0 }
  0x28 PF: > { %v1421_v1 = vld [vmem:[%s361_s6] sm:$0xff]  ;;  %s433_s26 = smul.u32 7, %s1962_s28  ;;  %vm459_vm2 = vcmask 130048   ;;  %s1589_s11 = smov 96  }
  0x29   : > { %470 = vmatpush.bf16.msra.mxu0 %v1421_v1  ;;  %559 = vmatpush.bf16.msra.mxu1 %v1421_v1  ;;  %s1365_s8 = smul.u32 14, %s1962_s28  ;;  %s1590_s12 = smov 16  }
  0x2a   : > { %s434_s27 = sadd.s32 %s1664_s9, %s433_s26  ;;  %643 = vmatpush.bf16.msra.mxu2 %v1421_v1  ;;  %726 = vmatpush.bf16.msra.mxu3 %v1421_v1  ;;  %s1591_s13 = smov 32  }
  0x2b   : > { %s435_s29 = sshra.s32 %s434_s27, 7  ;;  %s440_s30 = sand.u32 127, %s434_s27 }
  0x2c   : > { %s437_s4 = sadd.s32 %s1573_s17, %s435_s29  ;;  %s450_s10 = scalar_lea.vmem %s1671_s22, %s1365_s8 }
  0x2d   : > { %809 = vmatpush.bf16.msrb.mxu0 %v1421_v1  ;;  %893 = vmatpush.bf16.msrb.mxu1 %v1421_v1  ;;  %s1364_s16 = sshll.u32 %s437_s4, 7  ;;  %v431_v2 = vld [vmem:[#allocation2] sm:$0x3]  ;;  %s525_s14 = smul.u32 5, %s1962_s28 }
  0x2e   : > { %977 = vmatpush.bf16.msrb.mxu2 %v1421_v1  ;;  %1061 = vmatpush.bf16.msrb.mxu3 %v1421_v1  ;;  %s441_s5 = sadd.s32 %s1364_s16, %s440_s30  ;;  %v451_v7 = vld [vmem:[%s450_s10] sm:$0x3]  ;;  %v432_v12 = vld [vmem:[#allocation3] sm:$0x3]  ;;  %s609_s10 = smul.u32 3, %s1962_s28 }
  0x2f   : > { %s442_s6 = sld [smem:[#allocation5 + %s441_s5]]  ;;  %s526_s15 = sadd.s32 1, %s525_s14 }
  0x30   : > { %s527_s23 = sadd.s32 %s1664_s9, %s526_s15  ;;  %s1592_s5 = smov 80  }
  0x31   : > { %s528_s24 = sshra.s32 %s527_s23, 7  ;;  %s533_s29 = sand.u32 127, %s527_s23 }
  0x32   : > { %s530_s26 = sadd.s32 %s1573_s17, %s528_s24  ;;  %s610_s14 = sadd.s32 2, %s609_s10 }
  0x33   : > { %s1372_s27 = sshll.u32 %s530_s26, 7  ;;  %s611_s15 = sadd.s32 %s1664_s9, %s610_s14 }
  0x34   : > { %s534_s30 = sadd.s32 %s1372_s27, %s533_s29  ;;  %s612_s23 = sshra.s32 %s611_s15, 7 }
  0x35   : > { %p443_p10 = scmp.ne.s32.totalorder %s442_s6, 0  ;;  %s535_s4 = sld [smem:[#allocation5 + %s534_s30]] }
  0x36   : > { %s1373_s6 = smul.u32 10, %s1962_s28  ;;  %s614_s24 = sadd.s32 %s1573_s17, %s612_s23 }
  0x37   : > { %s444_s7 = scalar_select %p443_p10, 1, 0 }
  0x38   : > { %s1379_s26 = sshll.u32 %s614_s24, 7  ;;  %s617_s27 = sand.u32 127, %s611_s15 }
  0x39   : > { %v445_v3 = vstv %s444_s7  ;;  %s1227_s7 = scalar_lea.vmem %s1671_s22, %s1373_s6  ;;  %s618_s29 = sadd.s32 %s1379_s26, %s617_s27 }
  0x3a   : > { %vm1682_vm1 = vcmp.eq.s32.totalorder %v445_v3, 1  ;;  %v1374_v41 = vld [vmem:[%s1227_s7 + $0x2] sm:$0x3]  ;;  %s619_s30 = sld [smem:[#allocation5 + %s618_s29]]  ;;  %s693_s10 = sadd.s32 3, %s1962_s28 }
  0x3b   : > { %v447_v5 = vsel %vm1682_vm1, 0.0, %v431_v2  ;;  %v448_v13 = vsel %vm1682_vm1, 0.0, %v432_v12  ;;  %p536_p11 = scmp.ne.s32.totalorder %s535_s4, 0  ;;  %s694_s14 = sadd.s32 %s1664_s9, %s693_s10 }
  0x3c   : > { %v452_v6 = vpack.c.bf16 %v447_v5, %v447_v5  ;;  %s695_s15 = sshra.s32 %s694_s14, 7  ;;  %s700_s26 = sand.u32 127, %s694_s14 }
  0x3d   : > { %s537_s16 = scalar_select %p536_p11, 1, 0 }
  0x3e   : > { %1370 = vmatmul.msk.bf16.vlgmr.msra.gmra.mxu0 %vm459_vm2, %v452_v6  ;;  %s697_s23 = sadd.s32 %s1573_s17, %s695_s15  ;;  %s776_s10 = ssub.s32 4, %s1962_s28 }
  0x3f   : > { %v538_v34 = vstv %s537_s16  ;;  %s1380_s16 = smul.u32 6, %s1962_s28  ;;  %s1386_s24 = sshll.u32 %s697_s23, 7 }
  0x40   : > { %vm1704_vm7 = vcmp.eq.s32.totalorder %v538_v34, 1  ;;  %p620_p12 = scmp.ne.s32.totalorder %s619_s30, 0  ;;  %s701_s27 = sadd.s32 %s1386_s24, %s700_s26 }
  0x41   : > { %s1235_s7 = scalar_lea.vmem %s1671_s22, %s1380_s16  ;;  %s702_s29 = sld [smem:[#allocation5 + %s701_s27]] }
  0x42   : > { %s621_s4 = scalar_select %p620_p12, 1, 0 }
  0x43   : > { %s777_s14 = sadd.s32 %s1664_s9, %s776_s10 }
  0x44   : > { %v622_v2 = vstv %s621_s4  ;;  %s1927_s4 = sshll.u32 %s1962_s28, 1  ;;  %s778_s15 = sshra.s32 %s777_s14, 7 }
  0x45   : > { %vm1727_vm12 = vcmp.eq.s32.totalorder %v622_v2, 1  ;;  %s780_s23 = sadd.s32 %s1573_s17, %s778_s15  ;;  %s783_s26 = sand.u32 127, %s777_s14 }
  0x46   : > { %s1393_s24 = sshll.u32 %s780_s23, 7 }
  0x47   : > { %p703_p13 = scmp.ne.s32.totalorder %s702_s29, 0  ;;  %s784_s27 = sadd.s32 %s1393_s24, %s783_s26 }
  0x48   : > { %s785_s29 = sld [smem:[#allocation5 + %s784_s27]] }
  0x49   : > { %s704_s30 = scalar_select %p703_p13, 1, 0 }
  0x4b   : > { %v705_v34 = vstv %s704_s30 }
  0x4c   : > { %vm1750_vm1 = vcmp.eq.s32.totalorder %v705_v34, 1 }
  0x4e   : > { %p786_p0 = scmp.ne.s32.totalorder %s785_s29, 0 }
  0x50   : > { %s787_s30 = scalar_select %p786_p0, 1, 0 }
  0xbb   : > { %v472_v8 = vpop.f32.mrf.mxu0 }
  0xbc   : > { %v476_v9 = vadd.f32 %v472_v8, %v451_v7 }
  0xbe   : > { %1469 = vtanh.f32 %v476_v9  ;;  %v1371_v14 = vmul.f32 -1.442695, %v476_v9  ;;  %v1381_v9 = vld [vmem:[%s1235_s7 + $0x4] sm:$0x3]  ;;  %s1242_s7 = scalar_lea.vmem %s1671_s22, %s1927_s4 }
  0xc0   : > { %1471 = vpow2.f32 %v1371_v14 }
  0xc3   : > { %v474_v10 = vpop.f32.mrf.mxu0 }
  0xc4   : > { %v1470_v11 = vpop.eup %1469 }
  0xc5   : > { %503 = vrot.lane.b32.xlu0 %v1470_v11, %s1589_s11 }
  0xc6   : > { %v1472_v15 = vpop.eup %1471 }
  0xc7   : > { %v480_v16 = vadd.f32 1.0, %v1472_v15 }
  0xc9   : > { %1473 = vrcp.f32 %v480_v16  ;;  %v492_v22 = vand.u32 2147483648, %v480_v16  ;;  %vm486_vm4 = vweird.f32 %v480_v16  ;;  %v490_v23 = vand.u32 2147483647, %v480_v16 }
  0xcb   : > { %v493_v25 = vor.u32 1.1754944e-38, %v492_v22  ;;  %vm491_vm6 = vcmp.eq.f32.partialorder %v490_v23, 8.507059e+37 }
  0xcd   : > { %498 = vrot.lane.b32.xlu0 %v448_v13, %s1590_s12 }
  0xcf   : > { %v1474_v17 = vpop.eup %1473 }
  0xd0   : > { %v482_v18 = vmul.f32 %v1474_v17, %v480_v16  ;;  %vm487_vm3 = vweird.f32 %v1474_v17 }
  0xd1   : > { %vm488_vm5 = vmor %vm486_vm4, %vm487_vm3 }
  0xd2   : > { %v483_v19 = vsub.f32 1.0, %v482_v18 }
  0xd4   : > { %v484_v20 = vmul.f32 %v1474_v17, %v483_v19 }
  0xd6   : > { %v485_v21 = vadd.f32 %v1474_v17, %v484_v20 }
  0xd8   : > { %v489_v24 = vsel %vm488_vm5, %v1474_v17, %v485_v21 }
  0xd9   : > { %v494_v27 = vsel %vm491_vm6, %v493_v25, %v489_v24 }
 0x137   : > { %v504_v26 = vpop.permute.xlu0 %503 }
 0x138   : > { %v506_v28 = vmul.f32 %v504_v26, %v494_v27 }
 0x13a   : > { %508 = vrot.lane.b32.xlu1 %v506_v28, %s1590_s12 }
 0x13f   : > { %v499_v29 = vpop.permute.xlu0 %498 }
 0x140   : > { %v501_v30 = vmul.f32 %v499_v29, %v494_v27 }
 0x1ac   : > { %v509_v31 = vpop.permute.xlu1 %508 }
 0x1ad   : > { %v511_v32 = vadd.f32 %v509_v31, %v501_v30 }
 0x1af   : > { %1475 = vtanh.f32 %v511_v32  ;;  %v541_v61 = vsel %vm1704_vm7, 0.0, %v511_v32 }
 0x1b5   : > { %v1476_v33 = vpop.eup %1475 }
 0x1b6   : > { %514 = vrot.lane.b32.xlu1 %v1476_v33, %s1591_s13 }
 0x228   : > { %v515_v35 = vpop.permute.xlu1 %514 }
 0x229   : > { %v1702_v36 = vmul.f32 %v515_v35, %v494_v27 }
 0x22b   : > { %v540_v38 = vsel %vm1704_vm7, 0.0, %v1702_v36 }
 0x22c   : > { %v545_v39 = vpack.c.bf16 %v540_v38, %v540_v38 }
 0x22e   : > { %547 = vrot.lane.b32.xlu2 %v545_v39, %s1592_s5 }
 0x288   : > { %v548_v40 = vpop.permute.xlu2 %547 }
 0x289   : > { %1375 = vmatmul.msk.bf16.vlgmr.msra.gmra.mxu1 %vm459_vm2, %v548_v40 }
 0x306   : > { %v561_v42 = vpop.f32.mrf.mxu1 }
 0x307   : > { %v565_v43 = vadd.f32 %v1374_v41, %v561_v42  ;;  %v1388_v42 = vld [vmem:[%s1242_s7 + $0x6] sm:$0x3]  ;;  %s1782_s7 = sshll.u32 %s776_s10, 1  ;;  %s859_s10 = smul.u32 4294967293, %s1962_s28 }
 0x308   : > { %s793_s14 = scalar_lea.vmem %s1671_s22, %s1782_s7 }
 0x309   : > { %1477 = vtanh.f32 %v565_v43  ;;  %v1376_v46 = vmul.f32 -1.442695, %v565_v43  ;;  %s860_s15 = sadd.s32 5, %s859_s10  ;;  %s1928_s10 = smul.u32 4294967290, %s1962_s28 }
 0x30a   : > { %s861_s23 = sadd.s32 %s1664_s9, %s860_s15  ;;  %s943_s15 = smul.u32 4294967291, %s1962_s28 }
 0x30b   : > { %1479 = vpow2.f32 %v1376_v46  ;;  %s862_s24 = sshra.s32 %s861_s23, 7  ;;  %s867_s29 = sand.u32 127, %s861_s23 }
 0x30c   : > { %s864_s26 = sadd.s32 %s1573_s17, %s862_s24  ;;  %s944_s23 = sadd.s32 6, %s943_s15 }
 0x30d   : > { %s1397_s27 = sshll.u32 %s864_s26, 7  ;;  %s945_s24 = sadd.s32 %s1664_s9, %s944_s23 }
 0x30e   : > { %v563_v44 = vpop.f32.mrf.mxu1  ;;  %s946_s26 = sshra.s32 %s945_s24, 7  ;;  %s1929_s15 = smul.u32 4294967286, %s1962_s28 }
 0x30f   : > { %v1478_v45 = vpop.eup %1477  ;;  %s1027_s23 = smul.u32 4294967289, %s1962_s28 }
 0x310   : > { %588 = vrot.lane.b32.xlu2 %v1478_v45, %s1589_s11 }
 0x311   : > { %v1480_v47 = vpop.eup %1479 }
 0x312   : > { %v569_v48 = vadd.f32 1.0, %v1480_v47 }
 0x314   : > { %1481 = vrcp.f32 %v569_v48  ;;  %v581_v54 = vand.u32 2147483648, %v569_v48  ;;  %vm575_vm9 = vweird.f32 %v569_v48  ;;  %v579_v55 = vand.u32 2147483647, %v569_v48 }
 0x316   : > { %v582_v57 = vor.u32 1.1754944e-38, %v581_v54  ;;  %vm580_vm11 = vcmp.eq.f32.partialorder %v579_v55, 8.507059e+37 }
 0x31a   : > { %v1482_v49 = vpop.eup %1481 }
 0x31b   : > { %v571_v50 = vmul.f32 %v1482_v49, %v569_v48  ;;  %vm576_vm8 = vweird.f32 %v1482_v49 }
 0x31c   : > { %vm577_vm10 = vmor %vm575_vm9, %vm576_vm8 }
 0x31d   : > { %v572_v51 = vsub.f32 1.0, %v571_v50 }
 0x31f   : > { %v573_v52 = vmul.f32 %v1482_v49, %v572_v51 }
 0x321   : > { %v574_v53 = vadd.f32 %v1482_v49, %v573_v52 }
 0x323   : > { %v578_v56 = vsel %vm577_vm10, %v1482_v49, %v574_v53 }
 0x324   : > { %v583_v59 = vsel %vm580_vm11, %v582_v57, %v578_v56 }
 0x325   : > { %v586_v62 = vmul.f32 %v583_v59, %v541_v61 }
 0x36a   : > { %v589_v58 = vpop.permute.xlu2 %588 }
 0x36b   : > { %v591_v60 = vmul.f32 %v589_v58, %v583_v59 }
 0x36d   : > { %593 = vrot.lane.b32.xlu0 %v591_v60, %s1590_s12 }
 0x3df   : > { %v594_v63 = vpop.permute.xlu0 %593 }
 0x3e0   : > { %v596_v0 = vadd.f32 %v594_v63, %v586_v62 }
 0x3e2   : > { %1483 = vtanh.f32 %v596_v0  ;;  %v625_v29 = vsel %vm1727_vm12, 0.0, %v596_v0 }
 0x3e8   : > { %v1484_v1 = vpop.eup %1483 }
 0x3e9   : > { %599 = vrot.lane.b32.xlu1 %v1484_v1, %s1591_s13 }
 0x45b   : > { %v600_v3 = vpop.permute.xlu1 %599 }
 0x45c   : > { %v1725_v4 = vmul.f32 %v600_v3, %v583_v59  ;;  %v788_v3 = vstv %s787_s30  ;;  %s868_s30 = sadd.s32 %s1397_s27, %s867_s29  ;;  %s948_s27 = sadd.s32 %s1573_s17, %s946_s26 }
 0x45d   : > { %vm1773_vm7 = vcmp.eq.s32.totalorder %v788_v3, 1  ;;  %s1404_s29 = sshll.u32 %s948_s27, 7 }
 0x45e   : > { %v624_v6 = vsel %vm1727_vm12, 0.0, %v1725_v4 }
 0x45f   : > { %v629_v7 = vpack.c.bf16 %v624_v6, %v624_v6 }
 0x461   : > { %631 = vrot.lane.b32.xlu2 %v629_v7, %s1592_s5 }
 0x4bb   : > { %v632_v8 = vpop.permute.xlu2 %631 }
 0x4bc   : > { %1382 = vmatmul.msk.bf16.vlgmr.msra.gmra.mxu2 %vm459_vm2, %v632_v8 }
 0x53f   : > { %v645_v10 = vpop.f32.mrf.mxu2 }
 0x540   : > { %v649_v11 = vadd.f32 %v1381_v9, %v645_v10 }
 0x542   : > { %1485 = vtanh.f32 %v649_v11  ;;  %v1383_v14 = vmul.f32 -1.442695, %v649_v11  ;;  %v794_v11 = vld [vmem:[%s793_s14] sm:$0x3]  ;;  %s869_s14 = sld [smem:[#allocation5 + %s868_s30]]  ;;  %s951_s30 = sand.u32 127, %s945_s24 }
 0x543   : > { %s1028_s24 = sadd.s32 7, %s1027_s23  ;;  %s1947_s23 = smul.u32 4294967290, %s1962_s28 }
 0x544   : > { %1487 = vpow2.f32 %v1383_v14  ;;  %s1029_s26 = sadd.s32 %s1664_s9, %s1028_s24 }
 0x545   : > { %s1030_s27 = sshra.s32 %s1029_s26, 7  ;;  %s1257_s24 = scalar_lea.vmem %s1676_s25, %s1947_s23 }
 0x547   : > { %v647_v12 = vpop.f32.mrf.mxu2 }
 0x548   : > { %v1486_v13 = vpop.eup %1485  ;;  %p870_p1 = scmp.ne.s32.totalorder %s869_s14, 0  ;;  %s952_s14 = sadd.s32 %s1404_s29, %s951_s30 }
 0x549   : > { %672 = vrot.lane.b32.xlu0 %v1486_v13, %s1589_s11  ;;  %s1032_s29 = sadd.s32 %s1573_s17, %s1030_s27  ;;  %s1412_s17 = smul.u32 4294967282, %s1962_s28 }
 0x54a   : > { %v1488_v15 = vpop.eup %1487  ;;  %s871_s4 = scalar_select %p870_p1, 1, 0 }
 0x54b   : > { %v653_v16 = vadd.f32 1.0, %v1488_v15  ;;  %s1411_s30 = sshll.u32 %s1032_s29, 7  ;;  %s1269_s9 = scalar_lea.vmem %s1671_s22, %s1412_s17 }
 0x54c   : > { %v872_v38 = vstv %s871_s4  ;;  %s1253_s4 = scalar_lea.vmem %s1671_s22, %s1928_s10 }
 0x54d   : > { %1489 = vrcp.f32 %v653_v16  ;;  %v665_v22 = vand.u32 2147483648, %v653_v16  ;;  %vm659_vm14 = vweird.f32 %v653_v16  ;;  %v663_v23 = vand.u32 2147483647, %v653_v16 }
 0x54e   : > { %vm1796_vm12 = vcmp.eq.s32.totalorder %v872_v38, 1 }
 0x54f   : > { %v666_v25 = vor.u32 1.1754944e-38, %v665_v22  ;;  %vm664_vm0 = vcmp.eq.f32.partialorder %v663_v23, 8.507059e+37 }
 0x553   : > { %v1490_v17 = vpop.eup %1489 }
 0x554   : > { %v655_v18 = vmul.f32 %v1490_v17, %v653_v16  ;;  %vm660_vm13 = vweird.f32 %v1490_v17 }
 0x555   : > { %vm661_vm15 = vmor %vm659_vm14, %vm660_vm13 }
 0x556   : > { %v656_v19 = vsub.f32 1.0, %v655_v18 }
 0x558   : > { %v657_v20 = vmul.f32 %v1490_v17, %v656_v19 }
 0x55a   : > { %v658_v21 = vadd.f32 %v1490_v17, %v657_v20 }
 0x55c   : > { %v662_v24 = vsel %vm661_vm15, %v1490_v17, %v658_v21 }
 0x55d   : > { %v667_v27 = vsel %vm664_vm0, %v666_v25, %v662_v24 }
 0x55e   : > { %v670_v30 = vmul.f32 %v667_v27, %v625_v29 }
 0x5bb   : > { %v673_v26 = vpop.permute.xlu0 %672 }
 0x5bc   : > { %v675_v28 = vmul.f32 %v673_v26, %v667_v27 }
 0x5be   : > { %677 = vrot.lane.b32.xlu1 %v675_v28, %s1590_s12 }
 0x630   : > { %v678_v31 = vpop.permute.xlu1 %677 }
 0x631   : > { %v680_v32 = vadd.f32 %v678_v31, %v670_v30 }
 0x633   : > { %1491 = vtanh.f32 %v680_v32  ;;  %v708_v62 = vsel %vm1750_vm1, 0.0, %v680_v32 }
 0x639   : > { %v1492_v33 = vpop.eup %1491 }
 0x63a   : > { %683 = vrot.lane.b32.xlu2 %v1492_v33, %s1591_s13 }
 0x694   : > { %v684_v35 = vpop.permute.xlu2 %683 }
 0x695   : > { %v1748_v37 = vmul.f32 %v684_v35, %v667_v27 }
 0x697   : > { %v707_v39 = vsel %vm1750_vm1, 0.0, %v1748_v37 }
 0x698   : > { %v712_v40 = vpack.c.bf16 %v707_v39, %v707_v39 }
 0x69a   : > { %714 = vrot.lane.b32.xlu0 %v712_v40, %s1592_s5 }
 0x70c   : > { %v715_v41 = vpop.permute.xlu0 %714 }
 0x70d   : > { %1389 = vmatmul.msk.bf16.vlgmr.msra.gmra.mxu3 %vm459_vm2, %v715_v41 }
 0x790   : > { %v728_v43 = vpop.f32.mrf.mxu3 }
 0x791   : > { %v732_v44 = vadd.f32 %v1388_v42, %v728_v43 }
 0x793   : > { %1493 = vtanh.f32 %v732_v44  ;;  %v1390_v47 = vmul.f32 -1.442695, %v732_v44 }
 0x795   : > { %1495 = vpow2.f32 %v1390_v47 }
 0x798   : > { %v730_v45 = vpop.f32.mrf.mxu3 }
 0x799   : > { %v1494_v46 = vpop.eup %1493  ;;  %v1399_v45 = vld [vmem:[%s1253_s4 + $0xa] sm:$0x3]  ;;  %s953_s4 = sld [smem:[#allocation5 + %s952_s14]]  ;;  %s1035_s14 = sand.u32 127, %s1029_s26 }
 0x79a   : > { %755 = vrot.lane.b32.xlu1 %v1494_v46, %s1589_s11  ;;  %s1948_s26 = smul.u32 4294967286, %s1962_s28 }
 0x79b   : > { %v1496_v48 = vpop.eup %1495 }
 0x79c   : > { %v736_v49 = vadd.f32 1.0, %v1496_v48 }
 0x79e   : > { %1497 = vrcp.f32 %v736_v49  ;;  %v748_v55 = vand.u32 2147483648, %v736_v49  ;;  %vm742_vm4 = vweird.f32 %v736_v49  ;;  %v746_v56 = vand.u32 2147483647, %v736_v49 }
 0x79f   : > { %p954_p2 = scmp.ne.s32.totalorder %s953_s4, 0  ;;  %s1036_s4 = sadd.s32 %s1411_s30, %s1035_s14 }
 0x7a0   : > { %v749_v58 = vor.u32 1.1754944e-38, %v748_v55  ;;  %vm747_vm6 = vcmp.eq.f32.partialorder %v746_v56, 8.507059e+37 }
 0x7a1   : > { %s955_s10 = scalar_select %p954_p2, 1, 0 }
 0x7a4   : > { %v1498_v50 = vpop.eup %1497 }
 0x7a5   : > { %v738_v51 = vmul.f32 %v1498_v50, %v736_v49  ;;  %vm743_vm3 = vweird.f32 %v1498_v50 }
 0x7a6   : > { %vm744_vm5 = vmor %vm742_vm4, %vm743_vm3 }
 0x7a7   : > { %v739_v52 = vsub.f32 1.0, %v738_v51 }
 0x7a9   : > { %v740_v53 = vmul.f32 %v1498_v50, %v739_v52 }
 0x7ab   : > { %v741_v54 = vadd.f32 %v1498_v50, %v740_v53 }
 0x7ad   : > { %v745_v57 = vsel %vm744_vm5, %v1498_v50, %v741_v54 }
 0x7ae   : > { %v750_v60 = vsel %vm747_vm6, %v749_v58, %v745_v57 }
 0x7af   : > { %v753_v63 = vmul.f32 %v750_v60, %v708_v62 }
 0x80c   : > { %v756_v59 = vpop.permute.xlu1 %755 }
 0x80d   : > { %v758_v61 = vmul.f32 %v756_v59, %v750_v60 }
 0x80f   : > { %760 = vrot.lane.b32.xlu2 %v758_v61, %s1590_s12 }
 0x869   : > { %v761_v0 = vpop.permute.xlu2 %760 }
 0x86a   : > { %v763_v1 = vadd.f32 %v761_v0, %v753_v63 }
 0x86c   : > { %1499 = vtanh.f32 %v763_v1  ;;  %v791_v31 = vsel %vm1773_vm7, 0.0, %v763_v1 }
 0x872   : > { %v1500_v2 = vpop.eup %1499 }
 0x873   : > { %766 = vrot.lane.b32.xlu0 %v1500_v2, %s1591_s13 }
 0x8e5   : > { %v767_v5 = vpop.permute.xlu0 %766 }
 0x8e6   : > { %v1771_v6 = vmul.f32 %v767_v5, %v750_v60 }
 0x8e8   : > { %v790_v8 = vsel %vm1773_vm7, 0.0, %v1771_v6 }
 0x8e9   : > { %v795_v9 = vpack.c.bf16 %v790_v8, %v790_v8  ;;  %v956_v8 = vstv %s955_s10  ;;  %s1261_s10 = scalar_lea.vmem %s1671_s22, %s1929_s15  ;;  %s522_s22 = scalar_lea.vmem %s1676_s25, %s1365_s8 }
 0x8ea   : > { %vm1819_vm1 = vcmp.eq.s32.totalorder %v956_v8, 1  ;;  %s1231_s8 = scalar_lea.vmem %s1676_s25, %s1373_s6  ;;  %s1946_s6 = sshll.u32 %s1962_s28, 1 }
 0x8eb   : > { %797 = vrot.lane.b32.xlu1 %v795_v9, %s1592_s5 }
 0x95d   : > { %v798_v10 = vpop.permute.xlu1 %797 }
 0x95e   : > { %1395 = vmatmul.msk.bf16.vlgmr.msrb.gmra.mxu0 %vm459_vm2, %v798_v10 }
 0x9db   : > { %v811_v12 = vpop.f32.mrf.mxu0 }
 0x9dc   : > { %v815_v13 = vadd.f32 %v811_v12, %v794_v11 }
 0x9de   : > { %1501 = vtanh.f32 %v815_v13  ;;  %v1396_v16 = vmul.f32 -1.442695, %v815_v13 }
 0x9e0   : > { %1503 = vpow2.f32 %v1396_v16 }
 0x9e3   : > { %v813_v14 = vpop.f32.mrf.mxu0 }
 0x9e4   : > { %v1502_v15 = vpop.eup %1501 }
 0x9e5   : > { %838 = vrot.lane.b32.xlu2 %v1502_v15, %s1589_s11  ;;  %v1406_v15 = vld [vmem:[%s1261_s10 + $0xc] sm:$0x3]  ;;  %s1037_s10 = sld [smem:[#allocation5 + %s1036_s4]] }
 0x9e6   : > { %v1504_v17 = vpop.eup %1503 }
 0x9e7   : > { %v819_v18 = vadd.f32 1.0, %v1504_v17 }
 0x9e9   : > { %1505 = vrcp.f32 %v819_v18  ;;  %v831_v24 = vand.u32 2147483648, %v819_v18  ;;  %vm825_vm9 = vweird.f32 %v819_v18  ;;  %v829_v25 = vand.u32 2147483647, %v819_v18 }
 0x9eb   : > { %v832_v27 = vor.u32 1.1754944e-38, %v831_v24  ;;  %vm830_vm11 = vcmp.eq.f32.partialorder %v829_v25, 8.507059e+37  ;;  %p1038_p3 = scmp.ne.s32.totalorder %s1037_s10, 0 }
 0x9ed   : > { %s1039_s15 = scalar_select %p1038_p3, 1, 0 }
 0x9ef   : > { %v1506_v19 = vpop.eup %1505 }
 0x9f0   : > { %v821_v20 = vmul.f32 %v1506_v19, %v819_v18  ;;  %vm826_vm8 = vweird.f32 %v1506_v19 }
 0x9f1   : > { %vm827_vm10 = vmor %vm825_vm9, %vm826_vm8 }
 0x9f2   : > { %v822_v21 = vsub.f32 1.0, %v821_v20 }
 0x9f4   : > { %v823_v22 = vmul.f32 %v1506_v19, %v822_v21 }
 0x9f6   : > { %v824_v23 = vadd.f32 %v1506_v19, %v823_v22 }
 0x9f8   : > { %v828_v26 = vsel %vm827_vm10, %v1506_v19, %v824_v23 }
 0x9f9   : > { %v833_v29 = vsel %vm830_vm11, %v832_v27, %v828_v26  ;;  %vm523_vm11 = vcmask 123904  }
 0x9fa   : > { %v836_v32 = vmul.f32 %v833_v29, %v791_v31 }
 0xa3f   : > { %v839_v28 = vpop.permute.xlu2 %838 }
 0xa40   : > { %v841_v30 = vmul.f32 %v839_v28, %v833_v29 }
 0xa42   : > { %843 = vrot.lane.b32.xlu0 %v841_v30, %s1590_s12 }
 0xab4   : > { %v844_v33 = vpop.permute.xlu0 %843 }
 0xab5   : > { %v846_v34 = vadd.f32 %v844_v33, %v836_v32 }
 0xab7   : > { %1507 = vtanh.f32 %v846_v34  ;;  %v875_v1 = vsel %vm1796_vm12, 0.0, %v846_v34 }
 0xabd   : > { %v1508_v35 = vpop.eup %1507 }
 0xabe   : > { %849 = vrot.lane.b32.xlu1 %v1508_v35, %s1591_s13 }
 0xb30   : > { %v850_v39 = vpop.permute.xlu1 %849 }
 0xb31   : > { %v1794_v40 = vmul.f32 %v850_v39, %v833_v29 }
 0xb33   : > { %v874_v42 = vsel %vm1796_vm12, 0.0, %v1794_v40 }
 0xb34   : > { %v879_v43 = vpack.c.bf16 %v874_v42, %v874_v42 }
 0xb36   : > { %881 = vrot.lane.b32.xlu2 %v879_v43, %s1592_s5  ;;  %v1040_v43 = vstv %s1039_s15  ;;  %s857_s15 = scalar_lea.vmem %s1676_s25, %s1782_s7 }
 0xb37   : > { %vm1843_vm7 = vcmp.eq.s32.totalorder %v1040_v43, 1 }
 0xb90   : > { %v882_v44 = vpop.permute.xlu2 %881 }
 0xb91   : > { %1400 = vmatmul.msk.bf16.vlgmr.msrb.gmra.mxu1 %vm459_vm2, %v882_v44 }
 0xc0e   : > { %v895_v46 = vpop.f32.mrf.mxu1 }
 0xc0f   : > { %v899_v47 = vadd.f32 %v1399_v45, %v895_v46 }
 0xc11   : > { %1509 = vtanh.f32 %v899_v47  ;;  %v1401_v50 = vmul.f32 -1.442695, %v899_v47 }
 0xc13   : > { %1511 = vpow2.f32 %v1401_v50  ;;  %v1413_v50 = vld [vmem:[%s1269_s9 + $0xe] sm:$0x3] }
 0xc16   : > { %v897_v48 = vpop.f32.mrf.mxu1 }
 0xc17   : > { %v1510_v49 = vpop.eup %1509 }
 0xc18   : > { %922 = vrot.lane.b32.xlu0 %v1510_v49, %s1589_s11 }
 0xc19   : > { %v1512_v51 = vpop.eup %1511 }
 0xc1a   : > { %v903_v52 = vadd.f32 1.0, %v1512_v51 }
 0xc1c   : > { %1513 = vrcp.f32 %v903_v52  ;;  %v915_v58 = vand.u32 2147483648, %v903_v52  ;;  %vm909_vm14 = vweird.f32 %v903_v52  ;;  %v913_v59 = vand.u32 2147483647, %v903_v52 }
 0xc1e   : > { %v916_v61 = vor.u32 1.1754944e-38, %v915_v58  ;;  %vm914_vm0 = vcmp.eq.f32.partialorder %v913_v59, 8.507059e+37 }
 0xc22   : > { %v1514_v53 = vpop.eup %1513 }
 0xc23   : > { %v905_v54 = vmul.f32 %v1514_v53, %v903_v52  ;;  %vm910_vm13 = vweird.f32 %v1514_v53 }
 0xc24   : > { %vm911_vm15 = vmor %vm909_vm14, %vm910_vm13 }
 0xc25   : > { %v906_v55 = vsub.f32 1.0, %v905_v54 }
 0xc27   : > { %v907_v56 = vmul.f32 %v1514_v53, %v906_v55 }
 0xc29   : > { %v908_v57 = vadd.f32 %v1514_v53, %v907_v56 }
 0xc2b   : > { %v912_v60 = vsel %vm911_vm15, %v1514_v53, %v908_v57 }
 0xc2c   : > { %v917_v63 = vsel %vm914_vm0, %v916_v61, %v912_v60 }
 0xc2d   : > { %v920_v2 = vmul.f32 %v917_v63, %v875_v1 }
 0xc8a   : > { %v923_v62 = vpop.permute.xlu0 %922 }
 0xc8b   : > { %v925_v0 = vmul.f32 %v923_v62, %v917_v63 }
 0xc8d   : > { %927 = vrot.lane.b32.xlu1 %v925_v0, %s1590_s12 }
 0xcff   : > { %v928_v3 = vpop.permute.xlu1 %927 }
 0xd00   : > { %v930_v5 = vadd.f32 %v928_v3, %v920_v2 }
 0xd02   : > { %1515 = vtanh.f32 %v930_v5  ;;  %v959_v35 = vsel %vm1819_vm1, 0.0, %v930_v5 }
 0xd08   : > { %v1516_v7 = vpop.eup %1515 }
 0xd09   : > { %933 = vrot.lane.b32.xlu2 %v1516_v7, %s1591_s13 }
 0xd63   : > { %v934_v9 = vpop.permute.xlu2 %933 }
 0xd64   : > { %v1817_v10 = vmul.f32 %v934_v9, %v917_v63 }
 0xd66   : > { %v958_v12 = vsel %vm1819_vm1, 0.0, %v1817_v10 }
 0xd67   : > { %v963_v13 = vpack.c.bf16 %v958_v12, %v958_v12 }
 0xd69   : > { %965 = vrot.lane.b32.xlu0 %v963_v13, %s1592_s5 }
 0xddb   : > { %v966_v14 = vpop.permute.xlu0 %965 }
 0xddc   : > { %1407 = vmatmul.msk.bf16.vlgmr.msrb.gmra.mxu2 %vm459_vm2, %v966_v14 }
 0xe5f   : > { %v979_v16 = vpop.f32.mrf.mxu2 }
 0xe60   : > { %v983_v17 = vadd.f32 %v1406_v15, %v979_v16 }
 0xe62   : > { %1517 = vtanh.f32 %v983_v17  ;;  %v1408_v20 = vmul.f32 -1.442695, %v983_v17 }
 0xe64   : > { %1519 = vpow2.f32 %v1408_v20 }
 0xe67   : > { %v981_v18 = vpop.f32.mrf.mxu2 }
 0xe68   : > { %v1518_v19 = vpop.eup %1517 }
 0xe69   : > { %1006 = vrot.lane.b32.xlu1 %v1518_v19, %s1589_s11 }
 0xe6a   : > { %v1520_v21 = vpop.eup %1519 }
 0xe6b   : > { %v987_v22 = vadd.f32 1.0, %v1520_v21 }
 0xe6d   : > { %1521 = vrcp.f32 %v987_v22  ;;  %v999_v28 = vand.u32 2147483648, %v987_v22  ;;  %vm993_vm4 = vweird.f32 %v987_v22  ;;  %v997_v29 = vand.u32 2147483647, %v987_v22 }
 0xe6f   : > { %v1000_v31 = vor.u32 1.1754944e-38, %v999_v28  ;;  %vm998_vm6 = vcmp.eq.f32.partialorder %v997_v29, 8.507059e+37 }
 0xe73   : > { %v1522_v23 = vpop.eup %1521 }
 0xe74   : > { %v989_v24 = vmul.f32 %v1522_v23, %v987_v22  ;;  %vm994_vm3 = vweird.f32 %v1522_v23 }
 0xe75   : > { %vm995_vm5 = vmor %vm993_vm4, %vm994_vm3 }
 0xe76   : > { %v990_v25 = vsub.f32 1.0, %v989_v24 }
 0xe78   : > { %v991_v26 = vmul.f32 %v1522_v23, %v990_v25 }
 0xe7a   : > { %v992_v27 = vadd.f32 %v1522_v23, %v991_v26 }
 0xe7c   : > { %v996_v30 = vsel %vm995_vm5, %v1522_v23, %v992_v27 }
 0xe7d   : > { %v1001_v33 = vsel %vm998_vm6, %v1000_v31, %v996_v30 }
 0xe7e   : > { %v1004_v38 = vmul.f32 %v1001_v33, %v959_v35 }
 0xedb   : > { %v1007_v32 = vpop.permute.xlu1 %1006 }
 0xedc   : > { %v1009_v34 = vmul.f32 %v1007_v32, %v1001_v33 }
 0xede   : > { %1011 = vrot.lane.b32.xlu2 %v1009_v34, %s1590_s12 }
 0xf38   : > { %v1012_v39 = vpop.permute.xlu2 %1011 }
 0xf39   : > { %v1836_v41 = vadd.f32 %v1012_v39, %v1004_v38 }
 0xf3b   : > { %1523 = vtanh.f32 %v1836_v41  ;;  %v1043_v7 = vsel %vm1843_vm7, 0.0, %v1836_v41 }
 0xf41   : > { %v1524_v42 = vpop.eup %1523 }
 0xf42   : > { %1017 = vrot.lane.b32.xlu0 %v1524_v42, %s1591_s13 }
 0xfb4   : > { %v1018_v44 = vpop.permute.xlu0 %1017 }
 0xfb5   : > { %v1020_v45 = vmul.f32 %v1018_v44, %v1001_v33 }
 0xfb7   : > { %v1042_v47 = vsel %vm1843_vm7, 0.0, %v1020_v45 }
 0xfb8   : > { %v1047_v48 = vpack.c.bf16 %v1042_v47, %v1042_v47 }
 0xfba   : > { %1049 = vrot.lane.b32.xlu1 %v1047_v48, %s1592_s5 }
0x102c   : > { %v1050_v49 = vpop.permute.xlu1 %1049 }
0x102d   : > { %1414 = vmatmul.msk.bf16.vlgmr.msrb.gmra.mxu3 %vm459_vm2, %v1050_v49 }
0x10b0   : > { %v1063_v51 = vpop.f32.mrf.mxu3 }
0x10b1   : > { %v1067_v52 = vadd.f32 %v1413_v50, %v1063_v51 }
0x10b3   : > { %1525 = vtanh.f32 %v1067_v52  ;;  %v1415_v55 = vmul.f32 -1.442695, %v1067_v52 }
0x10b5   : > { %1527 = vpow2.f32 %v1415_v55 }
0x10b8   : > { %v1065_v53 = vpop.f32.mrf.mxu3 }
0x10b9   : > { %v1526_v54 = vpop.eup %1525 }
0x10ba   : > { %1090 = vrot.lane.b32.xlu2 %v1526_v54, %s1589_s11  ;;  %s1593_s11 = smov 112  }
0x10bb   : > { %v1528_v56 = vpop.eup %1527 }
0x10bc   : > { %v1071_v57 = vadd.f32 1.0, %v1528_v56 }
0x10be   : > { %1529 = vrcp.f32 %v1071_v57  ;;  %v1083_v63 = vand.u32 2147483648, %v1071_v57  ;;  %vm1077_vm8 = vweird.f32 %v1071_v57 }
0x10c0   : > { %v1084_v0 = vor.u32 1.1754944e-38, %v1083_v63 }
0x10c2   : > { %519 = vrot.lane.b32.xlu2 %v1702_v36, %s1592_s5  ;;  %v1081_v36 = vand.u32 2147483647, %v1071_v57 }
0x10c4   : > { %v1530_v58 = vpop.eup %1529  ;;  %vm1082_vm10 = vcmp.eq.f32.partialorder %v1081_v36, 8.507059e+37 }
0x10c5   : > { %v1073_v59 = vmul.f32 %v1530_v58, %v1071_v57  ;;  %vm1078_vm2 = vweird.f32 %v1530_v58 }
0x10c6   : > { %vm1079_vm9 = vmor %vm1077_vm8, %vm1078_vm2 }
0x10c7   : > { %v1074_v60 = vsub.f32 1.0, %v1073_v59 }
0x10c9   : > { %v1075_v61 = vmul.f32 %v1530_v58, %v1074_v60 }
0x10ca   : > { %771 = vrot.lane.b32.xlu2 %v1771_v6, %s1592_s5 }
0x10cb   : > { %v1076_v62 = vadd.f32 %v1530_v58, %v1075_v61 }
0x10cd   : > { %v1080_v6 = vsel %vm1079_vm9, %v1530_v58, %v1076_v62 }
0x10ce   : > { %v1085_v2 = vsel %vm1082_vm10, %v1084_v0, %v1080_v6 }
0x10cf   : > { %v1088_v8 = vmul.f32 %v1085_v2, %v1043_v7 }
0x10d2   : > { %1022 = vrot.lane.b32.xlu2 %v1020_v45, %s1592_s5 }
0x1114   : > { %v1091_v1 = vpop.permute.xlu2 %1090 }
0x1115   : > { %v1093_v3 = vmul.f32 %v1091_v1, %v1085_v2 }
0x1117   : > { %1095 = vrot.lane.b32.xlu0 %v1093_v3, %s1590_s12  ;;  %s1239_s12 = scalar_lea.vmem %s1676_s25, %s1380_s16  ;;  %s1273_s16 = scalar_lea.vmem %s1676_s25, %s1412_s17 }
0x111c   : > { %v520_v5 = vpop.permute.xlu2 %519 }
0x111d   : > { %524 = vst.msk [vmem:[%s522_s22] sm:$0x3] %vm523_vm11, %v520_v5 }
0x111f   : > { %604 = vrot.lane.b32.xlu0 %v1725_v4, %s1592_s5 }
0x1127   : > { %854 = vrot.lane.b32.xlu0 %v1794_v40, %s1592_s5 }
0x1189   : > { %v1096_v9 = vpop.permute.xlu0 %1095 }
0x118a   : > { %v1098_v11 = vadd.f32 %v1096_v9, %v1088_v8 }
0x118c   : > { %1531 = vtanh.f32 %v1098_v11 }
0x1191   : > { %v605_v4 = vpop.permute.xlu0 %604 }
0x1192   : > { %v1532_v12 = vpop.eup %1531  ;;  %1378 = vst.msk [vmem:[%s1231_s8 + $0x2] sm:$0x3] %vm523_vm11, %v605_v4 }
0x1193   : > { %1101 = vrot.lane.b32.xlu1 %v1532_v12, %s1591_s13  ;;  %s1245_s13 = scalar_lea.vmem %s1676_s25, %s1946_s6 }
0x119b   : > { %688 = vrot.lane.b32.xlu1 %v1748_v37, %s1592_s5  ;;  %v772_v37 = vpop.permute.xlu2 %771 }
0x11a3   : > { %938 = vrot.lane.b32.xlu1 %v1817_v10, %s1592_s5  ;;  %v855_v10 = vpop.permute.xlu0 %854  ;;  %v1023_v16 = vpop.permute.xlu2 %1022 }
0x11ab   : > { %1113 = vrot.lane.b32.xlu1 %v1098_v11, %s1593_s11 }
0x1205   : > { %v1102_v40 = vpop.permute.xlu1 %1101 }
0x1206   : > { %v1104_v13 = vmul.f32 %v1102_v40, %v1085_v2 }
0x1208   : > { %1106 = vrot.lane.b32.xlu0 %v1104_v13, %s1592_s5  ;;  %s1265_s5 = scalar_lea.vmem %s1676_s25, %s1948_s26 }
0x120d   : > { %v689_v14 = vpop.permute.xlu1 %688 }
0x120e   : > { %1385 = vst.msk [vmem:[%s1239_s12 + $0x4] sm:$0x3] %vm523_vm11, %v689_v14 }
0x120f   : > { %1392 = vst.msk [vmem:[%s1245_s13 + $0x6] sm:$0x3] %vm523_vm11, %v772_v37 }
0x1210   : > { %858 = vst.msk [vmem:[%s857_s15] sm:$0x3] %vm523_vm11, %v855_v10 }
0x1215   : > { %v939_v15 = vpop.permute.xlu1 %938 }
0x1216   : > { %1403 = vst.msk [vmem:[%s1257_s24 + $0xa] sm:$0x3] %vm523_vm11, %v939_v15 }
0x1217   : > { %1410 = vst.msk [vmem:[%s1265_s5 + $0xc] sm:$0x3] %vm523_vm11, %v1023_v16 }
0x121d   : > { %v1114_v17 = vpop.permute.xlu1 %1113 }
0x121e   : > { %1116 = vst.msk [vmem:[#allocation3] sm:$0x3] %vm523_vm11, %v1114_v17 }
0x127a   : > { %v1107_v18 = vpop.permute.xlu0 %1106 }
0x127b   : > { %1417 = vst.msk [vmem:[%s1273_s16 + $0xe] sm:$0x3] %vm523_vm11, %v1107_v18 }
0x127c   : > { %1111 = vst.msk [vmem:[#allocation2] sm:$0x3] %vm523_vm11, %v1107_v18 }
0x127d PF: > { %s21_s20 = sadd.s32 1, %s1585_s20   ;;  %s1949_s16 = smov %s1577_s18 }
0x127e   : > { %p18_p4 = scmp.ge.s32.totalorder %s21_s20, 18   ;;  %s1950_s17 = smov %s1581_s19 }
0x127f   : > { %s1951_s18 = smov %s1954_s0  ;;  %s1952_s19 = smov %s1958_s21 }
0x1280   :  { %20 = sbr.rel (!%p18_p4) target bundleno = 9 (0x9), region = 81 }

</bundles_post_ra>
